<compile_context>
chip_gen: v5e
topology: v5e:2x2
jax: 0.10.0
libtpu: 0.0.40
codegen_flags: <defaults>
</compile_context>

<pallas_src>
import functools

import jax
import jax.numpy as jnp
from jax.experimental import pallas as pl
from jax.experimental.pallas import tpu as pltpu

EPS = 1e-5


# ----------------------------------------------------------------------------------
# Fused Pallas kernel: whole forward pass for one batch tile
# ----------------------------------------------------------------------------------
def _fused_forward_kernel(x_ref, pool_ref,
                          w0_ref, a0_ref, b0_ref,
                          w1_ref, a1_ref, b1_ref,
                          w2_ref, a2_ref, b2_ref,
                          l1w_ref, l1b_ref, l2w_ref, l2b_ref, l3w_ref, l3b_ref,
                          mu_ref, std_ref,
                          pad_scr, col_scr, flat_scr,
                          *, NB, C_in, C0, C1, L, K0, K1, pool):
    """x_ref: (NB, C_in, L).  All conv activations are kept as (C, NB*L) lane-dense slabs.

    pad_scr : (Cmax, NB*Lp_max)   per-batch 'same'-padded activation slab (halo columns = 0)
    col_scr : (Kmax*Cmax, NB*L)   im2col slab (row block k = k-shifted window)
    flat_scr: (NB, C1*Lo)         flattened features for the MLP head
    """
    f32 = jnp.float32

    def fill_pad(rows_fn, cin, K):
        """Zero the halo slab, then write each batch element's rows into its padded window."""
        padw = K // 2
        Lp = L + 2 * padw
        pad_scr[...] = jnp.zeros_like(pad_scr)
        for n in range(NB):
            pad_scr[:cin, n * Lp + padw:n * Lp + padw + L] = rows_fn(n)

    def conv_bn(cin, K, w, scale, shift, relu):
        """Conv1d('same') + folded BatchNorm as ONE im2col matmul over the whole batch tile."""
        padw = K // 2
        Lp = L + 2 * padw
        for k in range(K):                       # build im2col columns (static unrolled copies)
            for n in range(NB):
                col_scr[k * cin:(k + 1) * cin, n * L:(n + 1) * L] = \
                    pad_scr[:cin, n * Lp + k:n * Lp + k + L]
        y = jnp.dot(w, col_scr[:K * cin, :], preferred_element_type=f32)   # (C_out, NB*L)
        y = y * scale + shift
        return jnp.maximum(y, 0.0) if relu else y

    # ---- stem: Conv1d + BatchNorm1d + ReLU --------------------------------------------------
    fill_pad(lambda n: x_ref[n], C_in, K0)
    h0 = conv_bn(C_in, K0, w0_ref[...], a0_ref[...], b0_ref[...], relu=True)        # (C0, NB*L)

    # ---- ResnetBlock1d: conv-bn-relu -> conv-bn, identity skip, relu ------------------------
    fill_pad(lambda n: h0[:, n * L:(n + 1) * L], C0, K1)
    r = conv_bn(C0, K1, w1_ref[...], a1_ref[...], b1_ref[...], relu=True)
    fill_pad(lambda n: r[:, n * L:(n + 1) * L], C1, K1)
    r = conv_bn(C1, K1, w2_ref[...], a2_ref[...], b2_ref[...], relu=False)
    y = jnp.maximum(r + h0, 0.0)                                                     # (C1, NB*L)

    # ---- AvgPool1d(pool) + ReLU + Flatten to (NB, C1*Lo) ------------------------------------
    Lo = L // pool
    P = pool_ref[...]                                                                # (L, Lo)
    for n in range(NB):
        pn = jnp.dot(y[:, n * L:(n + 1) * L], P, preferred_element_type=f32)         # (C1, Lo)
        pn = jnp.maximum(pn, 0.0)            # ReLU after pooling (Dropout == identity)
        for c in range(C1):                  # PyTorch flatten order: channel-major
            flat_scr[n:n + 1, c * Lo:(c + 1) * Lo] = pn[c:c + 1, :]
    flat = flat_scr[...]                                                              # (NB, C1*Lo)

    # ---- MLP head: Linear+ReLU, Linear+ReLU, Linear; chunk -> (mu, exp(log_std)) ------------
    h = jnp.maximum(jnp.dot(flat, l1w_ref[...], preferred_element_type=f32) + l1b_ref[...], 0.0)
    h = jnp.maximum(jnp.dot(h, l2w_ref[...], preferred_element_type=f32) + l2b_ref[...], 0.0)
    o = jnp.dot(h, l3w_ref[...], preferred_element_type=f32) + l3b_ref[...]
    half = o.shape[1] // 2
    mu_ref[...] = o[:, :half]
    std_ref[...] = jnp.exp(o[:, half:])


# ----------------------------------------------------------------------------------
# One-time parameter preparation (off the hot path)
# ----------------------------------------------------------------------------------
def prepare_params(p, *, in_size, maxpool):
    """Fold BN(eval)+bias into per-channel scale/shift, flatten conv weights for im2col,
    pre-transpose MLP weights, and precompute the AvgPool matrix — all exactly once."""
    def fold_conv(w, b, g, be, m, v):
        scale = g / jnp.sqrt(v + EPS)
        shift = be - m * scale + b * scale
        c_out, c_in, k = w.shape
        # contraction index = k*C_in + c_in, matching the im2col slab layout
        w_flat = jnp.transpose(w, (0, 2, 1)).reshape(c_out, k * c_in)
        return (w_flat.astype(jnp.float32),
                scale.reshape(-1, 1).astype(jnp.float32),
                shift.reshape(-1, 1).astype(jnp.float32))

    kp = {}
    kp["w0"], kp["a0"], kp["b0"] = fold_conv(p["c0_w"], p["c0_b"], p["bn0_g"], p["bn0_b"],
                                             p["bn0_m"], p["bn0_v"])
    kp["w1"], kp["a1"], kp["b1"] = fold_conv(p["r1_w"], p["r1_b"], p["rbn1_g"], p["rbn1_b"],
                                             p["rbn1_m"], p["rbn1_v"])
    kp["w2"], kp["a2"], kp["b2"] = fold_conv(p["r2_w"], p["r2_b"], p["rbn2_g"], p["rbn2_b"],
                                             p["rbn2_m"], p["rbn2_v"])
    kp["l1w"], kp["l1b"] = p["l1_w"].T.astype(jnp.float32), p["l1_b"].reshape(1, -1).astype(jnp.float32)
    kp["l2w"], kp["l2b"] = p["l2_w"].T.astype(jnp.float32), p["l2_b"].reshape(1, -1).astype(jnp.float32)
    kp["l3w"], kp["l3b"] = p["l3_w"].T.astype(jnp.float32), p["l3_b"].reshape(1, -1).astype(jnp.float32)

    lo = in_size // maxpool
    win = jnp.arange(in_size) // maxpool                       # AvgPool1d drops any tail
    kp["pool_mat"] = ((win[:, None] == jnp.arange(lo)[None, :]).astype(jnp.float32) / maxpool)
    return kp


# ----------------------------------------------------------------------------------
# Forward wrapper: single fused pallas_call
# ----------------------------------------------------------------------------------
def bresnet1d_forward(x, kp, *, maxpool, batch_tile=None):
    """x: (N, 1, input_channels, in_size) -> (mu, std) of the Normal distribution."""
    x = jnp.squeeze(x, axis=1).astype(jnp.float32)             # (N, C_in, L) — x.squeeze(1)
    N, C_in, L = x.shape
    C0 = kp["w0"].shape[0]
    C1 = kp["w2"].shape[0]
    K0 = kp["w0"].shape[1] // C_in
    K1 = kp["w1"].shape[1] // C0
    out_dim = kp["l3w"].shape[1]
    half = out_dim // 2

    NB = N if batch_tile is None else batch_tile
    assert N % NB == 0, "batch_tile must divide the batch size"

    c_max = max(C_in, C0, C1)
    k_max = max(K0, K1)
    lp_max = L + 2 * (k_max // 2)
    lo = L // maxpool

    kern = functools.partial(_fused_forward_kernel, NB=NB, C_in=C_in, C0=C0, C1=C1,
                             L=L, K0=K0, K1=K1, pool=maxpool)

    const_args = [kp[k] for k in ("w0", "a0", "b0", "w1", "a1", "b1", "w2", "a2", "b2",
                                  "l1w", "l1b", "l2w", "l2b", "l3w", "l3b")]
    in_specs = ([pl.BlockSpec((NB, C_in, L), lambda b: (b, 0, 0)),
                 pl.BlockSpec(kp["pool_mat"].shape, lambda b: (0, 0))]
                + [pl.BlockSpec(a.shape, lambda b: (0, 0)) for a in const_args])

    mu, std = pl.pallas_call(
        kern,
        out_shape=(jax.ShapeDtypeStruct((N, half), jnp.float32),
                   jax.ShapeDtypeStruct((N, half), jnp.float32)),
        grid=(N // NB,),
        in_specs=in_specs,
        out_specs=(pl.BlockSpec((NB, half), lambda b: (b, 0)),
                   pl.BlockSpec((NB, half), lambda b: (b, 0))),
        scratch_shapes=[pltpu.VMEM((c_max, NB * lp_max), jnp.float32),      # padded activations
                        pltpu.VMEM((k_max * c_max, NB * L), jnp.float32),   # im2col slab
                        pltpu.VMEM((NB, C1 * lo), jnp.float32)],            # flattened features
        compiler_params=pltpu.CompilerParams(dimension_semantics=("parallel",)),
    )(x, kp["pool_mat"], *const_args)
    return mu, std


# ----------------------------------------------------------------------------------
# Plain-JAX reference (same math) for a sanity check
# ----------------------------------------------------------------------------------
def _conv1d_bn_ref(x, w, b, g, be, m, v, relu):
    K = w.shape[2]
    pad = K // 2
    L = x.shape[2]
    xp = jnp.pad(x, ((0, 0), (0, 0), (pad, pad)))
    acc = jnp.zeros((x.shape[0], w.shape[0], L), jnp.float32)
    for k in range(K):
        acc = acc + jnp.einsum("oc,ncl->nol", w[:, :, k], xp[:, :, k:k + L])
    scale = g / jnp.sqrt(v + EPS)
    shift = be - m * scale + b * scale
    y = acc * scale[None, :, None] + shift[None, :, None]
    return jnp.maximum(y, 0.0) if relu else y


def _forward_ref(x, p, maxpool):
    x = jnp.squeeze(x, 1)
    h = _conv1d_bn_ref(x, p["c0_w"], p["c0_b"], p["bn0_g"], p["bn0_b"], p["bn0_m"], p["bn0_v"], True)
    r = _conv1d_bn_ref(h, p["r1_w"], p["r1_b"], p["rbn1_g"], p["rbn1_b"], p["rbn1_m"], p["rbn1_v"], True)
    r = _conv1d_bn_ref(r, p["r2_w"], p["r2_b"], p["rbn2_g"], p["rbn2_b"], p["rbn2_m"], p["rbn2_v"], False)
    y = jnp.maximum(r + h, 0.0)
    N, C, L = y.shape
    y = jnp.maximum(y.reshape(N, C, L // maxpool, maxpool).mean(-1), 0.0)
    flat = y.reshape(N, -1)
    h1 = jnp.maximum(flat @ p["l1_w"].T + p["l1_b"], 0.0)
    h2 = jnp.maximum(h1 @ p["l2_w"].T + p["l2_b"], 0.0)
    o = h2 @ p["l3_w"].T + p["l3_b"]
    half = o.shape[1] // 2
    return o[:, :half], jnp.exp(o[:, half:])


# ----------------------------------------------------------------------------------
# Deterministic parameter construction (PyTorch layout) + driver
# ----------------------------------------------------------------------------------
def _uniform(key, shape, fan_in):
    bound = 1.0 / jnp.sqrt(jnp.float32(fan_in))
    return jax.random.uniform(key, shape, jnp.float32, -bound, bound)


def make_params(key, in_ch, convs, ks, hidden, in_size, maxpool):
    keys = jax.random.split(key, 12)
    c0, c1 = convs
    flat_in = (in_size // maxpool ** (len(convs) - 1)) * convs[-1]
    ones, zeros = (lambda n: jnp.ones((n,), jnp.float32)), (lambda n: jnp.zeros((n,), jnp.float32))
    p = {
        # stem conv + bn
        "c0_w": _uniform(keys[0], (c0, in_ch, ks[0]), in_ch * ks[0]),
        "c0_b": _uniform(keys[1], (c0,), in_ch * ks[0]),
        "bn0_g": ones(c0), "bn0_b": zeros(c0), "bn0_m": zeros(c0), "bn0_v": ones(c0),
        # resnet block convs + bns
        "r1_w": _uniform(keys[2], (c1, c0, ks[1]), c0 * ks[1]),
        "r1_b": _uniform(keys[3], (c1,), c0 * ks[1]),
        "rbn1_g": ones(c1), "rbn1_b": zeros(c1), "rbn1_m": zeros(c1), "rbn1_v": ones(c1),
        "r2_w": _uniform(keys[4], (c1, c1, ks[1]), c1 * ks[1]),
        "r2_b": _uniform(keys[5], (c1,), c1 * ks[1]),
        "rbn2_g": ones(c1), "rbn2_b": zeros(c1), "rbn2_m": zeros(c1), "rbn2_v": ones(c1),
        # MLP head
        "l1_w": _uniform(keys[6], (hidden[0], flat_in), flat_in),
        "l1_b": _uniform(keys[7], (hidden[0],), flat_in),
        "l2_w": _uniform(keys[8], (hidden[1], hidden[0]), hidden[0]),
        "l2_b": _uniform(keys[9], (hidden[1],), hidden[0]),
        "l3_w": _uniform(keys[10], (4 + 4, hidden[1]), hidden[1]),
        "l3_b": _uniform(keys[11], (4 + 4,), hidden[1]),
    }
    return p


if __name__ == "__main__":
    # Small config consistent with the module defaults (scaled down).
    N, IN_CH, IN_SIZE = 2, 1, 64
    CONVS, KS, HIDDEN, MAXPOOL = [8, 8], [7, 7], [32, 16], 4

    root = jax.random.PRNGKey(0)
    k_params, k_x = jax.random.split(root)
    params = make_params(k_params, IN_CH, CONVS, KS, HIDDEN, IN_SIZE, MAXPOOL)
    kparams = prepare_params(params, in_size=IN_SIZE, maxpool=MAXPOOL)

    x = jax.random.normal(k_x, (N, 1, IN_CH, IN_SIZE), jnp.float32)

    fwd = jax.jit(functools.partial(bresnet1d_forward, maxpool=MAXPOOL))
    mu, std = fwd(x, kparams)
    mu, std = jax.block_until_ready(mu), jax.block_until_ready(std)

    assert mu.shape == (N, 4) and std.shape == (N, 4)
    assert bool(jnp.all(jnp.isfinite(mu))) and bool(jnp.all(std > 0))

    # Sanity check against a plain-JAX reference of the same math.
    mu_ref, std_ref = _forward_ref(x, params, MAXPOOL)
    assert jnp.allclose(mu, mu_ref, rtol=1e-3, atol=1e-3)
    assert jnp.allclose(std, std_ref, rtol=1e-3, atol=1e-3)

    print("KERNEL_OK")
</pallas_src>

<mosaic_0001>
module attributes {stable_mosaic.version = 11 : i64} {
  func.func @_fused_forward_kernel(%arg0: i32, %arg1: memref<2x1x64xf32, #tpu.memory_space<vmem>>, %arg2: memref<64x16xf32, #tpu.memory_space<vmem>>, %arg3: memref<8x7xf32, #tpu.memory_space<vmem>>, %arg4: memref<8x1xf32, #tpu.memory_space<vmem>>, %arg5: memref<8x1xf32, #tpu.memory_space<vmem>>, %arg6: memref<8x56xf32, #tpu.memory_space<vmem>>, %arg7: memref<8x1xf32, #tpu.memory_space<vmem>>, %arg8: memref<8x1xf32, #tpu.memory_space<vmem>>, %arg9: memref<8x56xf32, #tpu.memory_space<vmem>>, %arg10: memref<8x1xf32, #tpu.memory_space<vmem>>, %arg11: memref<8x1xf32, #tpu.memory_space<vmem>>, %arg12: memref<128x32xf32, #tpu.memory_space<vmem>>, %arg13: memref<1x32xf32, #tpu.memory_space<vmem>>, %arg14: memref<32x16xf32, #tpu.memory_space<vmem>>, %arg15: memref<1x16xf32, #tpu.memory_space<vmem>>, %arg16: memref<16x8xf32, #tpu.memory_space<vmem>>, %arg17: memref<1x8xf32, #tpu.memory_space<vmem>>, %arg18: memref<2x4xf32, #tpu.memory_space<vmem>>, %arg19: memref<2x4xf32, #tpu.memory_space<vmem>>, %arg20: memref<8x140xf32, #tpu.memory_space<vmem>>, %arg21: memref<56x128xf32, #tpu.memory_space<vmem>>, %arg22: memref<2x128xf32, #tpu.memory_space<vmem>>) attributes {dimension_semantics = [#tpu.dimension_semantics<parallel>], iteration_bounds = array<i64: 1>, scalar_prefetch = 0 : i64, scratch_operands = 3 : i64, tpu.core_type = #tpu.core_type<tc>, window_params = [{transform_indices = @transform_0, window_bounds = array<i64: 2, 1, 64>}, {pipeline_mode = #tpu.pipeline_mode<synchronous>, transform_indices = @transform_1, window_bounds = array<i64: 64, 16>}, {pipeline_mode = #tpu.pipeline_mode<synchronous>, transform_indices = @transform_2, window_bounds = array<i64: 8, 7>}, {pipeline_mode = #tpu.pipeline_mode<synchronous>, transform_indices = @transform_3, window_bounds = array<i64: 8, 1>}, {pipeline_mode = #tpu.pipeline_mode<synchronous>, transform_indices = @transform_4, window_bounds = array<i64: 8, 1>}, {pipeline_mode = #tpu.pipeline_mode<synchronous>, transform_indices = @transform_5, window_bounds = array<i64: 8, 56>}, {pipeline_mode = #tpu.pipeline_mode<synchronous>, transform_indices = @transform_6, window_bounds = array<i64: 8, 1>}, {pipeline_mode = #tpu.pipeline_mode<synchronous>, transform_indices = @transform_7, window_bounds = array<i64: 8, 1>}, {pipeline_mode = #tpu.pipeline_mode<synchronous>, transform_indices = @transform_8, window_bounds = array<i64: 8, 56>}, {pipeline_mode = #tpu.pipeline_mode<synchronous>, transform_indices = @transform_9, window_bounds = array<i64: 8, 1>}, {pipeline_mode = #tpu.pipeline_mode<synchronous>, transform_indices = @transform_10, window_bounds = array<i64: 8, 1>}, {pipeline_mode = #tpu.pipeline_mode<synchronous>, transform_indices = @transform_11, window_bounds = array<i64: 128, 32>}, {pipeline_mode = #tpu.pipeline_mode<synchronous>, transform_indices = @transform_12, window_bounds = array<i64: 1, 32>}, {pipeline_mode = #tpu.pipeline_mode<synchronous>, transform_indices = @transform_13, window_bounds = array<i64: 32, 16>}, {pipeline_mode = #tpu.pipeline_mode<synchronous>, transform_indices = @transform_14, window_bounds = array<i64: 1, 16>}, {pipeline_mode = #tpu.pipeline_mode<synchronous>, transform_indices = @transform_15, window_bounds = array<i64: 16, 8>}, {pipeline_mode = #tpu.pipeline_mode<synchronous>, transform_indices = @transform_16, window_bounds = array<i64: 1, 8>}, {transform_indices = @transform_17, window_bounds = array<i64: 2, 4>}, {transform_indices = @transform_18, window_bounds = array<i64: 2, 4>}]} {
    %cst = arith.constant 0.000000e+00 : f32
    %0 = vector.broadcast %cst : f32 to vector<8x140xf32>
    %c0 = arith.constant 0 : index
    %c0_0 = arith.constant 0 : index
    %1 = vector.load %arg20[%c0, %c0_0] : memref<8x140xf32, #tpu.memory_space<vmem>>, vector<8x140xf32>
    tpu.vector_store %arg20[%c0, %c0_0], %0 {strides = array<i32>} : memref<8x140xf32, #tpu.memory_space<vmem>>, vector<8x140xf32>,
    %c0_1 = arith.constant 0 : index
    %c0_2 = arith.constant 0 : index
    %c0_3 = arith.constant 0 : index
    %2 = vector.load %arg1[%c0_1, %c0_2, %c0_3] : memref<2x1x64xf32, #tpu.memory_space<vmem>>, vector<1x1x64xf32>
    %3 = vector.shape_cast %2 : vector<1x1x64xf32> to vector<1x64xf32>
    %c0_4 = arith.constant 0 : index
    %c3 = arith.constant 3 : index
    %4 = vector.load %arg20[%c0_4, %c3] : memref<8x140xf32, #tpu.memory_space<vmem>>, vector<1x64xf32>
    tpu.vector_store %arg20[%c0_4, %c3], %3 {strides = array<i32>} : memref<8x140xf32, #tpu.memory_space<vmem>>, vector<1x64xf32>,
    %c1 = arith.constant 1 : index
    %c0_5 = arith.constant 0 : index
    %c0_6 = arith.constant 0 : index
    %5 = vector.load %arg1[%c1, %c0_5, %c0_6] : memref<2x1x64xf32, #tpu.memory_space<vmem>>, vector<1x1x64xf32>
    %6 = vector.shape_cast %5 : vector<1x1x64xf32> to vector<1x64xf32>
    %c0_7 = arith.constant 0 : index
    %c73 = arith.constant 73 : index
    %7 = vector.load %arg20[%c0_7, %c73] : memref<8x140xf32, #tpu.memory_space<vmem>>, vector<1x64xf32>
    tpu.vector_store %arg20[%c0_7, %c73], %6 {strides = array<i32>} : memref<8x140xf32, #tpu.memory_space<vmem>>, vector<1x64xf32>,
    %c0_8 = arith.constant 0 : index
    %c0_9 = arith.constant 0 : index
    %8 = vector.load %arg3[%c0_8, %c0_9] : memref<8x7xf32, #tpu.memory_space<vmem>>, vector<8x7xf32>
    %c0_10 = arith.constant 0 : index
    %c0_11 = arith.constant 0 : index
    %9 = vector.load %arg4[%c0_10, %c0_11] : memref<8x1xf32, #tpu.memory_space<vmem>>, vector<8x1xf32>
    %c0_12 = arith.constant 0 : index
    %c0_13 = arith.constant 0 : index
    %10 = vector.load %arg5[%c0_12, %c0_13] : memref<8x1xf32, #tpu.memory_space<vmem>>, vector<8x1xf32>
    %c0_14 = arith.constant 0 : index
    %c0_15 = arith.constant 0 : index
    %11 = vector.load %arg20[%c0_14, %c0_15] : memref<8x140xf32, #tpu.memory_space<vmem>>, vector<1x64xf32>
    %c0_16 = arith.constant 0 : index
    %c0_17 = arith.constant 0 : index
    %12 = vector.load %arg21[%c0_16, %c0_17] : memref<56x128xf32, #tpu.memory_space<vmem>>, vector<1x64xf32>
    tpu.vector_store %arg21[%c0_16, %c0_17], %11 {strides = array<i32>} : memref<56x128xf32, #tpu.memory_space<vmem>>, vector<1x64xf32>,
    %c0_18 = arith.constant 0 : index
    %c70 = arith.constant 70 : index
    %13 = vector.load %arg20[%c0_18, %c70] : memref<8x140xf32, #tpu.memory_space<vmem>>, vector<1x64xf32>
    %c0_19 = arith.constant 0 : index
    %c64 = arith.constant 64 : index
    %14 = vector.load %arg21[%c0_19, %c64] : memref<56x128xf32, #tpu.memory_space<vmem>>, vector<1x64xf32>
    tpu.vector_store %arg21[%c0_19, %c64], %13 {strides = array<i32>} : memref<56x128xf32, #tpu.memory_space<vmem>>, vector<1x64xf32>,
    %c0_20 = arith.constant 0 : index
    %c1_21 = arith.constant 1 : index
    %15 = vector.load %arg20[%c0_20, %c1_21] : memref<8x140xf32, #tpu.memory_space<vmem>>, vector<1x64xf32>
    %c1_22 = arith.constant 1 : index
    %c0_23 = arith.constant 0 : index
    %16 = vector.load %arg21[%c1_22, %c0_23] : memref<56x128xf32, #tpu.memory_space<vmem>>, vector<1x64xf32>
    tpu.vector_store %arg21[%c1_22, %c0_23], %15 {strides = array<i32>} : memref<56x128xf32, #tpu.memory_space<vmem>>, vector<1x64xf32>,
    %c0_24 = arith.constant 0 : index
    %c71 = arith.constant 71 : index
    %17 = vector.load %arg20[%c0_24, %c71] : memref<8x140xf32, #tpu.memory_space<vmem>>, vector<1x64xf32>
    %c1_25 = arith.constant 1 : index
    %c64_26 = arith.constant 64 : index
    %18 = vector.load %arg21[%c1_25, %c64_26] : memref<56x128xf32, #tpu.memory_space<vmem>>, vector<1x64xf32>
    tpu.vector_store %arg21[%c1_25, %c64_26], %17 {strides = array<i32>} : memref<56x128xf32, #tpu.memory_space<vmem>>, vector<1x64xf32>,
    %c0_27 = arith.constant 0 : index
    %c2 = arith.constant 2 : index
    %19 = vector.load %arg20[%c0_27, %c2] : memref<8x140xf32, #tpu.memory_space<vmem>>, vector<1x64xf32>
    %c2_28 = arith.constant 2 : index
    %c0_29 = arith.constant 0 : index
    %20 = vector.load %arg21[%c2_28, %c0_29] : memref<56x128xf32, #tpu.memory_space<vmem>>, vector<1x64xf32>
    tpu.vector_store %arg21[%c2_28, %c0_29], %19 {strides = array<i32>} : memref<56x128xf32, #tpu.memory_space<vmem>>, vector<1x64xf32>,
    %c0_30 = arith.constant 0 : index
    %c72 = arith.constant 72 : index
    %21 = vector.load %arg20[%c0_30, %c72] : memref<8x140xf32, #tpu.memory_space<vmem>>, vector<1x64xf32>
    %c2_31 = arith.constant 2 : index
    %c64_32 = arith.constant 64 : index
    %22 = vector.load %arg21[%c2_31, %c64_32] : memref<56x128xf32, #tpu.memory_space<vmem>>, vector<1x64xf32>
    tpu.vector_store %arg21[%c2_31, %c64_32], %21 {strides = array<i32>} : memref<56x128xf32, #tpu.memory_space<vmem>>, vector<1x64xf32>,
    %c0_33 = arith.constant 0 : index
    %c3_34 = arith.constant 3 : index
    %23 = vector.load %arg20[%c0_33, %c3_34] : memref<8x140xf32, #tpu.memory_space<vmem>>, vector<1x64xf32>
    %c3_35 = arith.constant 3 : index
    %c0_36 = arith.constant 0 : index
    %24 = vector.load %arg21[%c3_35, %c0_36] : memref<56x128xf32, #tpu.memory_space<vmem>>, vector<1x64xf32>
    tpu.vector_store %arg21[%c3_35, %c0_36], %23 {strides = array<i32>} : memref<56x128xf32, #tpu.memory_space<vmem>>, vector<1x64xf32>,
    %c0_37 = arith.constant 0 : index
    %c73_38 = arith.constant 73 : index
    %25 = vector.load %arg20[%c0_37, %c73_38] : memref<8x140xf32, #tpu.memory_space<vmem>>, vector<1x64xf32>
    %c3_39 = arith.constant 3 : index
    %c64_40 = arith.constant 64 : index
    %26 = vector.load %arg21[%c3_39, %c64_40] : memref<56x128xf32, #tpu.memory_space<vmem>>, vector<1x64xf32>
    tpu.vector_store %arg21[%c3_39, %c64_40], %25 {strides = array<i32>} : memref<56x128xf32, #tpu.memory_space<vmem>>, vector<1x64xf32>,
    %c0_41 = arith.constant 0 : index
    %c4 = arith.constant 4 : index
    %27 = vector.load %arg20[%c0_41, %c4] : memref<8x140xf32, #tpu.memory_space<vmem>>, vector<1x64xf32>
    %c4_42 = arith.constant 4 : index
    %c0_43 = arith.constant 0 : index
    %28 = vector.load %arg21[%c4_42, %c0_43] : memref<56x128xf32, #tpu.memory_space<vmem>>, vector<1x64xf32>
    tpu.vector_store %arg21[%c4_42, %c0_43], %27 {strides = array<i32>} : memref<56x128xf32, #tpu.memory_space<vmem>>, vector<1x64xf32>,
    %c0_44 = arith.constant 0 : index
    %c74 = arith.constant 74 : index
    %29 = vector.load %arg20[%c0_44, %c74] : memref<8x140xf32, #tpu.memory_space<vmem>>, vector<1x64xf32>
    %c4_45 = arith.constant 4 : index
    %c64_46 = arith.constant 64 : index
    %30 = vector.load %arg21[%c4_45, %c64_46] : memref<56x128xf32, #tpu.memory_space<vmem>>, vector<1x64xf32>
    tpu.vector_store %arg21[%c4_45, %c64_46], %29 {strides = array<i32>} : memref<56x128xf32, #tpu.memory_space<vmem>>, vector<1x64xf32>,
    %c0_47 = arith.constant 0 : index
    %c5 = arith.constant 5 : index
    %31 = vector.load %arg20[%c0_47, %c5] : memref<8x140xf32, #tpu.memory_space<vmem>>, vector<1x64xf32>
    %c5_48 = arith.constant 5 : index
    %c0_49 = arith.constant 0 : index
    %32 = vector.load %arg21[%c5_48, %c0_49] : memref<56x128xf32, #tpu.memory_space<vmem>>, vector<1x64xf32>
    tpu.vector_store %arg21[%c5_48, %c0_49], %31 {strides = array<i32>} : memref<56x128xf32, #tpu.memory_space<vmem>>, vector<1x64xf32>,
    %c0_50 = arith.constant 0 : index
    %c75 = arith.constant 75 : index
    %33 = vector.load %arg20[%c0_50, %c75] : memref<8x140xf32, #tpu.memory_space<vmem>>, vector<1x64xf32>
    %c5_51 = arith.constant 5 : index
    %c64_52 = arith.constant 64 : index
    %34 = vector.load %arg21[%c5_51, %c64_52] : memref<56x128xf32, #tpu.memory_space<vmem>>, vector<1x64xf32>
    tpu.vector_store %arg21[%c5_51, %c64_52], %33 {strides = array<i32>} : memref<56x128xf32, #tpu.memory_space<vmem>>, vector<1x64xf32>,
    %c0_53 = arith.constant 0 : index
    %c6 = arith.constant 6 : index
    %35 = vector.load %arg20[%c0_53, %c6] : memref<8x140xf32, #tpu.memory_space<vmem>>, vector<1x64xf32>
    %c6_54 = arith.constant 6 : index
    %c0_55 = arith.constant 0 : index
    %36 = vector.load %arg21[%c6_54, %c0_55] : memref<56x128xf32, #tpu.memory_space<vmem>>, vector<1x64xf32>
    tpu.vector_store %arg21[%c6_54, %c0_55], %35 {strides = array<i32>} : memref<56x128xf32, #tpu.memory_space<vmem>>, vector<1x64xf32>,
    %c0_56 = arith.constant 0 : index
    %c76 = arith.constant 76 : index
    %37 = vector.load %arg20[%c0_56, %c76] : memref<8x140xf32, #tpu.memory_space<vmem>>, vector<1x64xf32>
    %c6_57 = arith.constant 6 : index
    %c64_58 = arith.constant 64 : index
    %38 = vector.load %arg21[%c6_57, %c64_58] : memref<56x128xf32, #tpu.memory_space<vmem>>, vector<1x64xf32>
    tpu.vector_store %arg21[%c6_57, %c64_58], %37 {strides = array<i32>} : memref<56x128xf32, #tpu.memory_space<vmem>>, vector<1x64xf32>,
    %c0_59 = arith.constant 0 : index
    %c0_60 = arith.constant 0 : index
    %39 = vector.load %arg21[%c0_59, %c0_60] : memref<56x128xf32, #tpu.memory_space<vmem>>, vector<7x128xf32>
    %cst_61 = arith.constant dense<0.000000e+00> : vector<8x128xf32>
    %40 = tpu.matmul %8, %39, %cst_61 {dimension_numbers = #tpu.dot_dimension_numbers<[1], [0], [0], [1], [0, 0, 1, 1], [], []>} : vector<8x7xf32>, vector<7x128xf32>, vector<8x128xf32> -> vector<8x128xf32>
    %41 = vector.broadcast %9 : vector<8x1xf32> to vector<8x128xf32>
    %42 = arith.mulf %40, %41 : vector<8x128xf32>
    %43 = vector.broadcast %10 : vector<8x1xf32> to vector<8x128xf32>
    %44 = arith.addf %42, %43 : vector<8x128xf32>
    %cst_62 = arith.constant 0.000000e+00 : f32
    %45 = vector.broadcast %cst_62 : f32 to vector<8x128xf32>
    %46 = arith.maximumf %44, %45 : vector<8x128xf32>
    %cst_63 = arith.constant 0.000000e+00 : f32
    %47 = vector.broadcast %cst_63 : f32 to vector<8x140xf32>
    %c0_64 = arith.constant 0 : index
    %c0_65 = arith.constant 0 : index
    %48 = vector.load %arg20[%c0_64, %c0_65] : memref<8x140xf32, #tpu.memory_space<vmem>>, vector<8x140xf32>
    tpu.vector_store %arg20[%c0_64, %c0_65], %47 {strides = array<i32>} : memref<8x140xf32, #tpu.memory_space<vmem>>, vector<8x140xf32>,
    %49 = vector.extract_strided_slice %46 {offsets = [0, 0], sizes = [8, 64], strides = [1, 1]} : vector<8x128xf32> to vector<8x64xf32>
    %c0_66 = arith.constant 0 : index
    %c3_67 = arith.constant 3 : index
    %50 = vector.load %arg20[%c0_66, %c3_67] : memref<8x140xf32, #tpu.memory_space<vmem>>, vector<8x64xf32>
    tpu.vector_store %arg20[%c0_66, %c3_67], %49 {strides = array<i32>} : memref<8x140xf32, #tpu.memory_space<vmem>>, vector<8x64xf32>,
    %51 = vector.extract_strided_slice %46 {offsets = [0, 64], sizes = [8, 64], strides = [1, 1]} : vector<8x128xf32> to vector<8x64xf32>
    %c0_68 = arith.constant 0 : index
    %c73_69 = arith.constant 73 : index
    %52 = vector.load %arg20[%c0_68, %c73_69] : memref<8x140xf32, #tpu.memory_space<vmem>>, vector<8x64xf32>
    tpu.vector_store %arg20[%c0_68, %c73_69], %51 {strides = array<i32>} : memref<8x140xf32, #tpu.memory_space<vmem>>, vector<8x64xf32>,
    %c0_70 = arith.constant 0 : index
    %c0_71 = arith.constant 0 : index
    %53 = vector.load %arg6[%c0_70, %c0_71] : memref<8x56xf32, #tpu.memory_space<vmem>>, vector<8x56xf32>
    %c0_72 = arith.constant 0 : index
    %c0_73 = arith.constant 0 : index
    %54 = vector.load %arg7[%c0_72, %c0_73] : memref<8x1xf32, #tpu.memory_space<vmem>>, vector<8x1xf32>
    %c0_74 = arith.constant 0 : index
    %c0_75 = arith.constant 0 : index
    %55 = vector.load %arg8[%c0_74, %c0_75] : memref<8x1xf32, #tpu.memory_space<vmem>>, vector<8x1xf32>
    %c0_76 = arith.constant 0 : index
    %c0_77 = arith.constant 0 : index
    %56 = vector.load %arg20[%c0_76, %c0_77] : memref<8x140xf32, #tpu.memory_space<vmem>>, vector<8x64xf32>
    %c0_78 = arith.constant 0 : index
    %c0_79 = arith.constant 0 : index
    %57 = vector.load %arg21[%c0_78, %c0_79] : memref<56x128xf32, #tpu.memory_space<vmem>>, vector<8x64xf32>
    tpu.vector_store %arg21[%c0_78, %c0_79], %56 {strides = array<i32>} : memref<56x128xf32, #tpu.memory_space<vmem>>, vector<8x64xf32>,
    %c0_80 = arith.constant 0 : index
    %c70_81 = arith.constant 70 : index
    %58 = vector.load %arg20[%c0_80, %c70_81] : memref<8x140xf32, #tpu.memory_space<vmem>>, vector<8x64xf32>
    %c0_82 = arith.constant 0 : index
    %c64_83 = arith.constant 64 : index
    %59 = vector.load %arg21[%c0_82, %c64_83] : memref<56x128xf32, #tpu.memory_space<vmem>>, vector<8x64xf32>
    tpu.vector_store %arg21[%c0_82, %c64_83], %58 {strides = array<i32>} : memref<56x128xf32, #tpu.memory_space<vmem>>, vector<8x64xf32>,
    %c0_84 = arith.constant 0 : index
    %c1_85 = arith.constant 1 : index
    %60 = vector.load %arg20[%c0_84, %c1_85] : memref<8x140xf32, #tpu.memory_space<vmem>>, vector<8x64xf32>
    %c8 = arith.constant 8 : index
    %c0_86 = arith.constant 0 : index
    %61 = vector.load %arg21[%c8, %c0_86] : memref<56x128xf32, #tpu.memory_space<vmem>>, vector<8x64xf32>
    tpu.vector_store %arg21[%c8, %c0_86], %60 {strides = array<i32>} : memref<56x128xf32, #tpu.memory_space<vmem>>, vector<8x64xf32>,
    %c0_87 = arith.constant 0 : index
    %c71_88 = arith.constant 71 : index
    %62 = vector.load %arg20[%c0_87, %c71_88] : memref<8x140xf32, #tpu.memory_space<vmem>>, vector<8x64xf32>
    %c8_89 = arith.constant 8 : index
    %c64_90 = arith.constant 64 : index
    %63 = vector.load %arg21[%c8_89, %c64_90] : memref<56x128xf32, #tpu.memory_space<vmem>>, vector<8x64xf32>
    tpu.vector_store %arg21[%c8_89, %c64_90], %62 {strides = array<i32>} : memref<56x128xf32, #tpu.memory_space<vmem>>, vector<8x64xf32>,
    %c0_91 = arith.constant 0 : index
    %c2_92 = arith.constant 2 : index
    %64 = vector.load %arg20[%c0_91, %c2_92] : memref<8x140xf32, #tpu.memory_space<vmem>>, vector<8x64xf32>
    %c16 = arith.constant 16 : index
    %c0_93 = arith.constant 0 : index
    %65 = vector.load %arg21[%c16, %c0_93] : memref<56x128xf32, #tpu.memory_space<vmem>>, vector<8x64xf32>
    tpu.vector_store %arg21[%c16, %c0_93], %64 {strides = array<i32>} : memref<56x128xf32, #tpu.memory_space<vmem>>, vector<8x64xf32>,
    %c0_94 = arith.constant 0 : index
    %c72_95 = arith.constant 72 : index
    %66 = vector.load %arg20[%c0_94, %c72_95] : memref<8x140xf32, #tpu.memory_space<vmem>>, vector<8x64xf32>
    %c16_96 = arith.constant 16 : index
    %c64_97 = arith.constant 64 : index
    %67 = vector.load %arg21[%c16_96, %c64_97] : memref<56x128xf32, #tpu.memory_space<vmem>>, vector<8x64xf32>
    tpu.vector_store %arg21[%c16_96, %c64_97], %66 {strides = array<i32>} : memref<56x128xf32, #tpu.memory_space<vmem>>, vector<8x64xf32>,
    %c0_98 = arith.constant 0 : index
    %c3_99 = arith.constant 3 : index
    %68 = vector.load %arg20[%c0_98, %c3_99] : memref<8x140xf32, #tpu.memory_space<vmem>>, vector<8x64xf32>
    %c24 = arith.constant 24 : index
    %c0_100 = arith.constant 0 : index
    %69 = vector.load %arg21[%c24, %c0_100] : memref<56x128xf32, #tpu.memory_space<vmem>>, vector<8x64xf32>
    tpu.vector_store %arg21[%c24, %c0_100], %68 {strides = array<i32>} : memref<56x128xf32, #tpu.memory_space<vmem>>, vector<8x64xf32>,
    %c0_101 = arith.constant 0 : index
    %c73_102 = arith.constant 73 : index
    %70 = vector.load %arg20[%c0_101, %c73_102] : memref<8x140xf32, #tpu.memory_space<vmem>>, vector<8x64xf32>
    %c24_103 = arith.constant 24 : index
    %c64_104 = arith.constant 64 : index
    %71 = vector.load %arg21[%c24_103, %c64_104] : memref<56x128xf32, #tpu.memory_space<vmem>>, vector<8x64xf32>
    tpu.vector_store %arg21[%c24_103, %c64_104], %70 {strides = array<i32>} : memref<56x128xf32, #tpu.memory_space<vmem>>, vector<8x64xf32>,
    %c0_105 = arith.constant 0 : index
    %c4_106 = arith.constant 4 : index
    %72 = vector.load %arg20[%c0_105, %c4_106] : memref<8x140xf32, #tpu.memory_space<vmem>>, vector<8x64xf32>
    %c32 = arith.constant 32 : index
    %c0_107 = arith.constant 0 : index
    %73 = vector.load %arg21[%c32, %c0_107] : memref<56x128xf32, #tpu.memory_space<vmem>>, vector<8x64xf32>
    tpu.vector_store %arg21[%c32, %c0_107], %72 {strides = array<i32>} : memref<56x128xf32, #tpu.memory_space<vmem>>, vector<8x64xf32>,
    %c0_108 = arith.constant 0 : index
    %c74_109 = arith.constant 74 : index
    %74 = vector.load %arg20[%c0_108, %c74_109] : memref<8x140xf32, #tpu.memory_space<vmem>>, vector<8x64xf32>
    %c32_110 = arith.constant 32 : index
    %c64_111 = arith.constant 64 : index
    %75 = vector.load %arg21[%c32_110, %c64_111] : memref<56x128xf32, #tpu.memory_space<vmem>>, vector<8x64xf32>
    tpu.vector_store %arg21[%c32_110, %c64_111], %74 {strides = array<i32>} : memref<56x128xf32, #tpu.memory_space<vmem>>, vector<8x64xf32>,
    %c0_112 = arith.constant 0 : index
    %c5_113 = arith.constant 5 : index
    %76 = vector.load %arg20[%c0_112, %c5_113] : memref<8x140xf32, #tpu.memory_space<vmem>>, vector<8x64xf32>
    %c40 = arith.constant 40 : index
    %c0_114 = arith.constant 0 : index
    %77 = vector.load %arg21[%c40, %c0_114] : memref<56x128xf32, #tpu.memory_space<vmem>>, vector<8x64xf32>
    tpu.vector_store %arg21[%c40, %c0_114], %76 {strides = array<i32>} : memref<56x128xf32, #tpu.memory_space<vmem>>, vector<8x64xf32>,
    %c0_115 = arith.constant 0 : index
    %c75_116 = arith.constant 75 : index
    %78 = vector.load %arg20[%c0_115, %c75_116] : memref<8x140xf32, #tpu.memory_space<vmem>>, vector<8x64xf32>
    %c40_117 = arith.constant 40 : index
    %c64_118 = arith.constant 64 : index
    %79 = vector.load %arg21[%c40_117, %c64_118] : memref<56x128xf32, #tpu.memory_space<vmem>>, vector<8x64xf32>
    tpu.vector_store %arg21[%c40_117, %c64_118], %78 {strides = array<i32>} : memref<56x128xf32, #tpu.memory_space<vmem>>, vector<8x64xf32>,
    %c0_119 = arith.constant 0 : index
    %c6_120 = arith.constant 6 : index
    %80 = vector.load %arg20[%c0_119, %c6_120] : memref<8x140xf32, #tpu.memory_space<vmem>>, vector<8x64xf32>
    %c48 = arith.constant 48 : index
    %c0_121 = arith.constant 0 : index
    %81 = vector.load %arg21[%c48, %c0_121] : memref<56x128xf32, #tpu.memory_space<vmem>>, vector<8x64xf32>
    tpu.vector_store %arg21[%c48, %c0_121], %80 {strides = array<i32>} : memref<56x128xf32, #tpu.memory_space<vmem>>, vector<8x64xf32>,
    %c0_122 = arith.constant 0 : index
    %c76_123 = arith.constant 76 : index
    %82 = vector.load %arg20[%c0_122, %c76_123] : memref<8x140xf32, #tpu.memory_space<vmem>>, vector<8x64xf32>
    %c48_124 = arith.constant 48 : index
    %c64_125 = arith.constant 64 : index
    %83 = vector.load %arg21[%c48_124, %c64_125] : memref<56x128xf32, #tpu.memory_space<vmem>>, vector<8x64xf32>
    tpu.vector_store %arg21[%c48_124, %c64_125], %82 {strides = array<i32>} : memref<56x128xf32, #tpu.memory_space<vmem>>, vector<8x64xf32>,
    %c0_126 = arith.constant 0 : index
    %c0_127 = arith.constant 0 : index
    %84 = vector.load %arg21[%c0_126, %c0_127] : memref<56x128xf32, #tpu.memory_space<vmem>>, vector<56x128xf32>
    %cst_128 = arith.constant dense<0.000000e+00> : vector<8x128xf32>
    %85 = tpu.matmul %53, %84, %cst_128 {dimension_numbers = #tpu.dot_dimension_numbers<[1], [0], [0], [1], [0, 0, 1, 1], [], []>} : vector<8x56xf32>, vector<56x128xf32>, vector<8x128xf32> -> vector<8x128xf32>
    %86 = vector.broadcast %54 : vector<8x1xf32> to vector<8x128xf32>
    %87 = arith.mulf %85, %86 : vector<8x128xf32>
    %88 = vector.broadcast %55 : vector<8x1xf32> to vector<8x128xf32>
    %89 = arith.addf %87, %88 : vector<8x128xf32>
    %cst_129 = arith.constant 0.000000e+00 : f32
    %90 = vector.broadcast %cst_129 : f32 to vector<8x128xf32>
    %91 = arith.maximumf %89, %90 : vector<8x128xf32>
    %cst_130 = arith.constant 0.000000e+00 : f32
    %92 = vector.broadcast %cst_130 : f32 to vector<8x140xf32>
    %c0_131 = arith.constant 0 : index
    %c0_132 = arith.constant 0 : index
    %93 = vector.load %arg20[%c0_131, %c0_132] : memref<8x140xf32, #tpu.memory_space<vmem>>, vector<8x140xf32>
    tpu.vector_store %arg20[%c0_131, %c0_132], %92 {strides = array<i32>} : memref<8x140xf32, #tpu.memory_space<vmem>>, vector<8x140xf32>,
    %94 = vector.extract_strided_slice %91 {offsets = [0, 0], sizes = [8, 64], strides = [1, 1]} : vector<8x128xf32> to vector<8x64xf32>
    %c0_133 = arith.constant 0 : index
    %c3_134 = arith.constant 3 : index
    %95 = vector.load %arg20[%c0_133, %c3_134] : memref<8x140xf32, #tpu.memory_space<vmem>>, vector<8x64xf32>
    tpu.vector_store %arg20[%c0_133, %c3_134], %94 {strides = array<i32>} : memref<8x140xf32, #tpu.memory_space<vmem>>, vector<8x64xf32>,
    %96 = vector.extract_strided_slice %91 {offsets = [0, 64], sizes = [8, 64], strides = [1, 1]} : vector<8x128xf32> to vector<8x64xf32>
    %c0_135 = arith.constant 0 : index
    %c73_136 = arith.constant 73 : index
    %97 = vector.load %arg20[%c0_135, %c73_136] : memref<8x140xf32, #tpu.memory_space<vmem>>, vector<8x64xf32>
    tpu.vector_store %arg20[%c0_135, %c73_136], %96 {strides = array<i32>} : memref<8x140xf32, #tpu.memory_space<vmem>>, vector<8x64xf32>,
    %c0_137 = arith.constant 0 : index
    %c0_138 = arith.constant 0 : index
    %98 = vector.load %arg9[%c0_137, %c0_138] : memref<8x56xf32, #tpu.memory_space<vmem>>, vector<8x56xf32>
    %c0_139 = arith.constant 0 : index
    %c0_140 = arith.constant 0 : index
    %99 = vector.load %arg10[%c0_139, %c0_140] : memref<8x1xf32, #tpu.memory_space<vmem>>, vector<8x1xf32>
    %c0_141 = arith.constant 0 : index
    %c0_142 = arith.constant 0 : index
    %100 = vector.load %arg11[%c0_141, %c0_142] : memref<8x1xf32, #tpu.memory_space<vmem>>, vector<8x1xf32>
    %c0_143 = arith.constant 0 : index
    %c0_144 = arith.constant 0 : index
    %101 = vector.load %arg20[%c0_143, %c0_144] : memref<8x140xf32, #tpu.memory_space<vmem>>, vector<8x64xf32>
    %c0_145 = arith.constant 0 : index
    %c0_146 = arith.constant 0 : index
    %102 = vector.load %arg21[%c0_145, %c0_146] : memref<56x128xf32, #tpu.memory_space<vmem>>, vector<8x64xf32>
    tpu.vector_store %arg21[%c0_145, %c0_146], %101 {strides = array<i32>} : memref<56x128xf32, #tpu.memory_space<vmem>>, vector<8x64xf32>,
    %c0_147 = arith.constant 0 : index
    %c70_148 = arith.constant 70 : index
    %103 = vector.load %arg20[%c0_147, %c70_148] : memref<8x140xf32, #tpu.memory_space<vmem>>, vector<8x64xf32>
    %c0_149 = arith.constant 0 : index
    %c64_150 = arith.constant 64 : index
    %104 = vector.load %arg21[%c0_149, %c64_150] : memref<56x128xf32, #tpu.memory_space<vmem>>, vector<8x64xf32>
    tpu.vector_store %arg21[%c0_149, %c64_150], %103 {strides = array<i32>} : memref<56x128xf32, #tpu.memory_space<vmem>>, vector<8x64xf32>,
    %c0_151 = arith.constant 0 : index
    %c1_152 = arith.constant 1 : index
    %105 = vector.load %arg20[%c0_151, %c1_152] : memref<8x140xf32, #tpu.memory_space<vmem>>, vector<8x64xf32>
    %c8_153 = arith.constant 8 : index
    %c0_154 = arith.constant 0 : index
    %106 = vector.load %arg21[%c8_153, %c0_154] : memref<56x128xf32, #tpu.memory_space<vmem>>, vector<8x64xf32>
    tpu.vector_store %arg21[%c8_153, %c0_154], %105 {strides = array<i32>} : memref<56x128xf32, #tpu.memory_space<vmem>>, vector<8x64xf32>,
    %c0_155 = arith.constant 0 : index
    %c71_156 = arith.constant 71 : index
    %107 = vector.load %arg20[%c0_155, %c71_156] : memref<8x140xf32, #tpu.memory_space<vmem>>, vector<8x64xf32>
    %c8_157 = arith.constant 8 : index
    %c64_158 = arith.constant 64 : index
    %108 = vector.load %arg21[%c8_157, %c64_158] : memref<56x128xf32, #tpu.memory_space<vmem>>, vector<8x64xf32>
    tpu.vector_store %arg21[%c8_157, %c64_158], %107 {strides = array<i32>} : memref<56x128xf32, #tpu.memory_space<vmem>>, vector<8x64xf32>,
    %c0_159 = arith.constant 0 : index
    %c2_160 = arith.constant 2 : index
    %109 = vector.load %arg20[%c0_159, %c2_160] : memref<8x140xf32, #tpu.memory_space<vmem>>, vector<8x64xf32>
    %c16_161 = arith.constant 16 : index
    %c0_162 = arith.constant 0 : index
    %110 = vector.load %arg21[%c16_161, %c0_162] : memref<56x128xf32, #tpu.memory_space<vmem>>, vector<8x64xf32>
    tpu.vector_store %arg21[%c16_161, %c0_162], %109 {strides = array<i32>} : memref<56x128xf32, #tpu.memory_space<vmem>>, vector<8x64xf32>,
    %c0_163 = arith.constant 0 : index
    %c72_164 = arith.constant 72 : index
    %111 = vector.load %arg20[%c0_163, %c72_164] : memref<8x140xf32, #tpu.memory_space<vmem>>, vector<8x64xf32>
    %c16_165 = arith.constant 16 : index
    %c64_166 = arith.constant 64 : index
    %112 = vector.load %arg21[%c16_165, %c64_166] : memref<56x128xf32, #tpu.memory_space<vmem>>, vector<8x64xf32>
    tpu.vector_store %arg21[%c16_165, %c64_166], %111 {strides = array<i32>} : memref<56x128xf32, #tpu.memory_space<vmem>>, vector<8x64xf32>,
    %c0_167 = arith.constant 0 : index
    %c3_168 = arith.constant 3 : index
    %113 = vector.load %arg20[%c0_167, %c3_168] : memref<8x140xf32, #tpu.memory_space<vmem>>, vector<8x64xf32>
    %c24_169 = arith.constant 24 : index
    %c0_170 = arith.constant 0 : index
    %114 = vector.load %arg21[%c24_169, %c0_170] : memref<56x128xf32, #tpu.memory_space<vmem>>, vector<8x64xf32>
    tpu.vector_store %arg21[%c24_169, %c0_170], %113 {strides = array<i32>} : memref<56x128xf32, #tpu.memory_space<vmem>>, vector<8x64xf32>,
    %c0_171 = arith.constant 0 : index
    %c73_172 = arith.constant 73 : index
    %115 = vector.load %arg20[%c0_171, %c73_172] : memref<8x140xf32, #tpu.memory_space<vmem>>, vector<8x64xf32>
    %c24_173 = arith.constant 24 : index
    %c64_174 = arith.constant 64 : index
    %116 = vector.load %arg21[%c24_173, %c64_174] : memref<56x128xf32, #tpu.memory_space<vmem>>, vector<8x64xf32>
    tpu.vector_store %arg21[%c24_173, %c64_174], %115 {strides = array<i32>} : memref<56x128xf32, #tpu.memory_space<vmem>>, vector<8x64xf32>,
    %c0_175 = arith.constant 0 : index
    %c4_176 = arith.constant 4 : index
    %117 = vector.load %arg20[%c0_175, %c4_176] : memref<8x140xf32, #tpu.memory_space<vmem>>, vector<8x64xf32>
    %c32_177 = arith.constant 32 : index
    %c0_178 = arith.constant 0 : index
    %118 = vector.load %arg21[%c32_177, %c0_178] : memref<56x128xf32, #tpu.memory_space<vmem>>, vector<8x64xf32>
    tpu.vector_store %arg21[%c32_177, %c0_178], %117 {strides = array<i32>} : memref<56x128xf32, #tpu.memory_space<vmem>>, vector<8x64xf32>,
    %c0_179 = arith.constant 0 : index
    %c74_180 = arith.constant 74 : index
    %119 = vector.load %arg20[%c0_179, %c74_180] : memref<8x140xf32, #tpu.memory_space<vmem>>, vector<8x64xf32>
    %c32_181 = arith.constant 32 : index
    %c64_182 = arith.constant 64 : index
    %120 = vector.load %arg21[%c32_181, %c64_182] : memref<56x128xf32, #tpu.memory_space<vmem>>, vector<8x64xf32>
    tpu.vector_store %arg21[%c32_181, %c64_182], %119 {strides = array<i32>} : memref<56x128xf32, #tpu.memory_space<vmem>>, vector<8x64xf32>,
    %c0_183 = arith.constant 0 : index
    %c5_184 = arith.constant 5 : index
    %121 = vector.load %arg20[%c0_183, %c5_184] : memref<8x140xf32, #tpu.memory_space<vmem>>, vector<8x64xf32>
    %c40_185 = arith.constant 40 : index
    %c0_186 = arith.constant 0 : index
    %122 = vector.load %arg21[%c40_185, %c0_186] : memref<56x128xf32, #tpu.memory_space<vmem>>, vector<8x64xf32>
    tpu.vector_store %arg21[%c40_185, %c0_186], %121 {strides = array<i32>} : memref<56x128xf32, #tpu.memory_space<vmem>>, vector<8x64xf32>,
    %c0_187 = arith.constant 0 : index
    %c75_188 = arith.constant 75 : index
    %123 = vector.load %arg20[%c0_187, %c75_188] : memref<8x140xf32, #tpu.memory_space<vmem>>, vector<8x64xf32>
    %c40_189 = arith.constant 40 : index
    %c64_190 = arith.constant 64 : index
    %124 = vector.load %arg21[%c40_189, %c64_190] : memref<56x128xf32, #tpu.memory_space<vmem>>, vector<8x64xf32>
    tpu.vector_store %arg21[%c40_189, %c64_190], %123 {strides = array<i32>} : memref<56x128xf32, #tpu.memory_space<vmem>>, vector<8x64xf32>,
    %c0_191 = arith.constant 0 : index
    %c6_192 = arith.constant 6 : index
    %125 = vector.load %arg20[%c0_191, %c6_192] : memref<8x140xf32, #tpu.memory_space<vmem>>, vector<8x64xf32>
    %c48_193 = arith.constant 48 : index
    %c0_194 = arith.constant 0 : index
    %126 = vector.load %arg21[%c48_193, %c0_194] : memref<56x128xf32, #tpu.memory_space<vmem>>, vector<8x64xf32>
    tpu.vector_store %arg21[%c48_193, %c0_194], %125 {strides = array<i32>} : memref<56x128xf32, #tpu.memory_space<vmem>>, vector<8x64xf32>,
    %c0_195 = arith.constant 0 : index
    %c76_196 = arith.constant 76 : index
    %127 = vector.load %arg20[%c0_195, %c76_196] : memref<8x140xf32, #tpu.memory_space<vmem>>, vector<8x64xf32>
    %c48_197 = arith.constant 48 : index
    %c64_198 = arith.constant 64 : index
    %128 = vector.load %arg21[%c48_197, %c64_198] : memref<56x128xf32, #tpu.memory_space<vmem>>, vector<8x64xf32>
    tpu.vector_store %arg21[%c48_197, %c64_198], %127 {strides = array<i32>} : memref<56x128xf32, #tpu.memory_space<vmem>>, vector<8x64xf32>,
    %c0_199 = arith.constant 0 : index
    %c0_200 = arith.constant 0 : index
    %129 = vector.load %arg21[%c0_199, %c0_200] : memref<56x128xf32, #tpu.memory_space<vmem>>, vector<56x128xf32>
    %cst_201 = arith.constant dense<0.000000e+00> : vector<8x128xf32>
    %130 = tpu.matmul %98, %129, %cst_201 {dimension_numbers = #tpu.dot_dimension_numbers<[1], [0], [0], [1], [0, 0, 1, 1], [], []>} : vector<8x56xf32>, vector<56x128xf32>, vector<8x128xf32> -> vector<8x128xf32>
    %131 = vector.broadcast %99 : vector<8x1xf32> to vector<8x128xf32>
    %132 = arith.mulf %130, %131 : vector<8x128xf32>
    %133 = vector.broadcast %100 : vector<8x1xf32> to vector<8x128xf32>
    %134 = arith.addf %132, %133 : vector<8x128xf32>
    %135 = arith.addf %134, %46 : vector<8x128xf32>
    %cst_202 = arith.constant 0.000000e+00 : f32
    %136 = vector.broadcast %cst_202 : f32 to vector<8x128xf32>
    %137 = arith.maximumf %135, %136 : vector<8x128xf32>
    %c0_203 = arith.constant 0 : index
    %c0_204 = arith.constant 0 : index
    %138 = vector.load %arg2[%c0_203, %c0_204] : memref<64x16xf32, #tpu.memory_space<vmem>>, vector<64x16xf32>
    %139 = vector.extract_strided_slice %137 {offsets = [0, 0], sizes = [8, 64], strides = [1, 1]} : vector<8x128xf32> to vector<8x64xf32>
    %cst_205 = arith.constant dense<0.000000e+00> : vector<8x16xf32>
    %140 = tpu.matmul %139, %138, %cst_205 {dimension_numbers = #tpu.dot_dimension_numbers<[1], [0], [0], [1], [0, 0, 1, 1], [], []>} : vector<8x64xf32>, vector<64x16xf32>, vector<8x16xf32> -> vector<8x16xf32>
    %cst_206 = arith.constant 0.000000e+00 : f32
    %141 = vector.broadcast %cst_206 : f32 to vector<8x16xf32>
    %142 = arith.maximumf %140, %141 : vector<8x16xf32>
    %143 = vector.extract_strided_slice %142 {offsets = [0, 0], sizes = [1, 16], strides = [1, 1]} : vector<8x16xf32> to vector<1x16xf32>
    %c0_207 = arith.constant 0 : index
    %c0_208 = arith.constant 0 : index
    %144 = vector.load %arg22[%c0_207, %c0_208] : memref<2x128xf32, #tpu.memory_space<vmem>>, vector<1x16xf32>
    tpu.vector_store %arg22[%c0_207, %c0_208], %143 {strides = array<i32>} : memref<2x128xf32, #tpu.memory_space<vmem>>, vector<1x16xf32>,
    %145 = vector.extract_strided_slice %142 {offsets = [1, 0], sizes = [1, 16], strides = [1, 1]} : vector<8x16xf32> to vector<1x16xf32>
    %c0_209 = arith.constant 0 : index
    %c16_210 = arith.constant 16 : index
    %146 = vector.load %arg22[%c0_209, %c16_210] : memref<2x128xf32, #tpu.memory_space<vmem>>, vector<1x16xf32>
    tpu.vector_store %arg22[%c0_209, %c16_210], %145 {strides = array<i32>} : memref<2x128xf32, #tpu.memory_space<vmem>>, vector<1x16xf32>,
    %147 = vector.extract_strided_slice %142 {offsets = [2, 0], sizes = [1, 16], strides = [1, 1]} : vector<8x16xf32> to vector<1x16xf32>
    %c0_211 = arith.constant 0 : index
    %c32_212 = arith.constant 32 : index
    %148 = vector.load %arg22[%c0_211, %c32_212] : memref<2x128xf32, #tpu.memory_space<vmem>>, vector<1x16xf32>
    tpu.vector_store %arg22[%c0_211, %c32_212], %147 {strides = array<i32>} : memref<2x128xf32, #tpu.memory_space<vmem>>, vector<1x16xf32>,
    %149 = vector.extract_strided_slice %142 {offsets = [3, 0], sizes = [1, 16], strides = [1, 1]} : vector<8x16xf32> to vector<1x16xf32>
    %c0_213 = arith.constant 0 : index
    %c48_214 = arith.constant 48 : index
    %150 = vector.load %arg22[%c0_213, %c48_214] : memref<2x128xf32, #tpu.memory_space<vmem>>, vector<1x16xf32>
    tpu.vector_store %arg22[%c0_213, %c48_214], %149 {strides = array<i32>} : memref<2x128xf32, #tpu.memory_space<vmem>>, vector<1x16xf32>,
    %151 = vector.extract_strided_slice %142 {offsets = [4, 0], sizes = [1, 16], strides = [1, 1]} : vector<8x16xf32> to vector<1x16xf32>
    %c0_215 = arith.constant 0 : index
    %c64_216 = arith.constant 64 : index
    %152 = vector.load %arg22[%c0_215, %c64_216] : memref<2x128xf32, #tpu.memory_space<vmem>>, vector<1x16xf32>
    tpu.vector_store %arg22[%c0_215, %c64_216], %151 {strides = array<i32>} : memref<2x128xf32, #tpu.memory_space<vmem>>, vector<1x16xf32>,
    %153 = vector.extract_strided_slice %142 {offsets = [5, 0], sizes = [1, 16], strides = [1, 1]} : vector<8x16xf32> to vector<1x16xf32>
    %c0_217 = arith.constant 0 : index
    %c80 = arith.constant 80 : index
    %154 = vector.load %arg22[%c0_217, %c80] : memref<2x128xf32, #tpu.memory_space<vmem>>, vector<1x16xf32>
    tpu.vector_store %arg22[%c0_217, %c80], %153 {strides = array<i32>} : memref<2x128xf32, #tpu.memory_space<vmem>>, vector<1x16xf32>,
    %155 = vector.extract_strided_slice %142 {offsets = [6, 0], sizes = [1, 16], strides = [1, 1]} : vector<8x16xf32> to vector<1x16xf32>
    %c0_218 = arith.constant 0 : index
    %c96 = arith.constant 96 : index
    %156 = vector.load %arg22[%c0_218, %c96] : memref<2x128xf32, #tpu.memory_space<vmem>>, vector<1x16xf32>
    tpu.vector_store %arg22[%c0_218, %c96], %155 {strides = array<i32>} : memref<2x128xf32, #tpu.memory_space<vmem>>, vector<1x16xf32>,
    %157 = vector.extract_strided_slice %142 {offsets = [7, 0], sizes = [1, 16], strides = [1, 1]} : vector<8x16xf32> to vector<1x16xf32>
    %c0_219 = arith.constant 0 : index
    %c112 = arith.constant 112 : index
    %158 = vector.load %arg22[%c0_219, %c112] : memref<2x128xf32, #tpu.memory_space<vmem>>, vector<1x16xf32>
    tpu.vector_store %arg22[%c0_219, %c112], %157 {strides = array<i32>} : memref<2x128xf32, #tpu.memory_space<vmem>>, vector<1x16xf32>,
    %159 = vector.extract_strided_slice %137 {offsets = [0, 64], sizes = [8, 64], strides = [1, 1]} : vector<8x128xf32> to vector<8x64xf32>
    %cst_220 = arith.constant dense<0.000000e+00> : vector<8x16xf32>
    %160 = tpu.matmul %159, %138, %cst_220 {dimension_numbers = #tpu.dot_dimension_numbers<[1], [0], [0], [1], [0, 0, 1, 1], [], []>} : vector<8x64xf32>, vector<64x16xf32>, vector<8x16xf32> -> vector<8x16xf32>
    %cst_221 = arith.constant 0.000000e+00 : f32
    %161 = vector.broadcast %cst_221 : f32 to vector<8x16xf32>
    %162 = arith.maximumf %160, %161 : vector<8x16xf32>
    %163 = vector.extract_strided_slice %162 {offsets = [0, 0], sizes = [1, 16], strides = [1, 1]} : vector<8x16xf32> to vector<1x16xf32>
    %c1_222 = arith.constant 1 : index
    %c0_223 = arith.constant 0 : index
    %164 = vector.load %arg22[%c1_222, %c0_223] : memref<2x128xf32, #tpu.memory_space<vmem>>, vector<1x16xf32>
    tpu.vector_store %arg22[%c1_222, %c0_223], %163 {strides = array<i32>} : memref<2x128xf32, #tpu.memory_space<vmem>>, vector<1x16xf32>,
    %165 = vector.extract_strided_slice %162 {offsets = [1, 0], sizes = [1, 16], strides = [1, 1]} : vector<8x16xf32> to vector<1x16xf32>
    %c1_224 = arith.constant 1 : index
    %c16_225 = arith.constant 16 : index
    %166 = vector.load %arg22[%c1_224, %c16_225] : memref<2x128xf32, #tpu.memory_space<vmem>>, vector<1x16xf32>
    tpu.vector_store %arg22[%c1_224, %c16_225], %165 {strides = array<i32>} : memref<2x128xf32, #tpu.memory_space<vmem>>, vector<1x16xf32>,
    %167 = vector.extract_strided_slice %162 {offsets = [2, 0], sizes = [1, 16], strides = [1, 1]} : vector<8x16xf32> to vector<1x16xf32>
    %c1_226 = arith.constant 1 : index
    %c32_227 = arith.constant 32 : index
    %168 = vector.load %arg22[%c1_226, %c32_227] : memref<2x128xf32, #tpu.memory_space<vmem>>, vector<1x16xf32>
    tpu.vector_store %arg22[%c1_226, %c32_227], %167 {strides = array<i32>} : memref<2x128xf32, #tpu.memory_space<vmem>>, vector<1x16xf32>,
    %169 = vector.extract_strided_slice %162 {offsets = [3, 0], sizes = [1, 16], strides = [1, 1]} : vector<8x16xf32> to vector<1x16xf32>
    %c1_228 = arith.constant 1 : index
    %c48_229 = arith.constant 48 : index
    %170 = vector.load %arg22[%c1_228, %c48_229] : memref<2x128xf32, #tpu.memory_space<vmem>>, vector<1x16xf32>
    tpu.vector_store %arg22[%c1_228, %c48_229], %169 {strides = array<i32>} : memref<2x128xf32, #tpu.memory_space<vmem>>, vector<1x16xf32>,
    %171 = vector.extract_strided_slice %162 {offsets = [4, 0], sizes = [1, 16], strides = [1, 1]} : vector<8x16xf32> to vector<1x16xf32>
    %c1_230 = arith.constant 1 : index
    %c64_231 = arith.constant 64 : index
    %172 = vector.load %arg22[%c1_230, %c64_231] : memref<2x128xf32, #tpu.memory_space<vmem>>, vector<1x16xf32>
    tpu.vector_store %arg22[%c1_230, %c64_231], %171 {strides = array<i32>} : memref<2x128xf32, #tpu.memory_space<vmem>>, vector<1x16xf32>,
    %173 = vector.extract_strided_slice %162 {offsets = [5, 0], sizes = [1, 16], strides = [1, 1]} : vector<8x16xf32> to vector<1x16xf32>
    %c1_232 = arith.constant 1 : index
    %c80_233 = arith.constant 80 : index
    %174 = vector.load %arg22[%c1_232, %c80_233] : memref<2x128xf32, #tpu.memory_space<vmem>>, vector<1x16xf32>
    tpu.vector_store %arg22[%c1_232, %c80_233], %173 {strides = array<i32>} : memref<2x128xf32, #tpu.memory_space<vmem>>, vector<1x16xf32>,
    %175 = vector.extract_strided_slice %162 {offsets = [6, 0], sizes = [1, 16], strides = [1, 1]} : vector<8x16xf32> to vector<1x16xf32>
    %c1_234 = arith.constant 1 : index
    %c96_235 = arith.constant 96 : index
    %176 = vector.load %arg22[%c1_234, %c96_235] : memref<2x128xf32, #tpu.memory_space<vmem>>, vector<1x16xf32>
    tpu.vector_store %arg22[%c1_234, %c96_235], %175 {strides = array<i32>} : memref<2x128xf32, #tpu.memory_space<vmem>>, vector<1x16xf32>,
    %177 = vector.extract_strided_slice %162 {offsets = [7, 0], sizes = [1, 16], strides = [1, 1]} : vector<8x16xf32> to vector<1x16xf32>
    %c1_236 = arith.constant 1 : index
    %c112_237 = arith.constant 112 : index
    %178 = vector.load %arg22[%c1_236, %c112_237] : memref<2x128xf32, #tpu.memory_space<vmem>>, vector<1x16xf32>
    tpu.vector_store %arg22[%c1_236, %c112_237], %177 {strides = array<i32>} : memref<2x128xf32, #tpu.memory_space<vmem>>, vector<1x16xf32>,
    %c0_238 = arith.constant 0 : index
    %c0_239 = arith.constant 0 : index
    %179 = vector.load %arg22[%c0_238, %c0_239] : memref<2x128xf32, #tpu.memory_space<vmem>>, vector<2x128xf32>
    %c0_240 = arith.constant 0 : index
    %c0_241 = arith.constant 0 : index
    %180 = vector.load %arg12[%c0_240, %c0_241] : memref<128x32xf32, #tpu.memory_space<vmem>>, vector<128x32xf32>
    %cst_242 = arith.constant dense<0.000000e+00> : vector<2x32xf32>
    %181 = tpu.matmul %179, %180, %cst_242 {dimension_numbers = #tpu.dot_dimension_numbers<[1], [0], [0], [1], [0, 0, 1, 1], [], []>} : vector<2x128xf32>, vector<128x32xf32>, vector<2x32xf32> -> vector<2x32xf32>
    %c0_243 = arith.constant 0 : index
    %c0_244 = arith.constant 0 : index
    %182 = vector.load %arg13[%c0_243, %c0_244] : memref<1x32xf32, #tpu.memory_space<vmem>>, vector<1x32xf32>
    %183 = vector.broadcast %182 : vector<1x32xf32> to vector<2x32xf32>
    %184 = arith.addf %181, %183 : vector<2x32xf32>
    %cst_245 = arith.constant 0.000000e+00 : f32
    %185 = vector.broadcast %cst_245 : f32 to vector<2x32xf32>
    %186 = arith.maximumf %184, %185 : vector<2x32xf32>
    %c0_246 = arith.constant 0 : index
    %c0_247 = arith.constant 0 : index
    %187 = vector.load %arg14[%c0_246, %c0_247] : memref<32x16xf32, #tpu.memory_space<vmem>>, vector<32x16xf32>
    %cst_248 = arith.constant dense<0.000000e+00> : vector<2x16xf32>
    %188 = tpu.matmul %186, %187, %cst_248 {dimension_numbers = #tpu.dot_dimension_numbers<[1], [0], [0], [1], [0, 0, 1, 1], [], []>} : vector<2x32xf32>, vector<32x16xf32>, vector<2x16xf32> -> vector<2x16xf32>
    %c0_249 = arith.constant 0 : index
    %c0_250 = arith.constant 0 : index
    %189 = vector.load %arg15[%c0_249, %c0_250] : memref<1x16xf32, #tpu.memory_space<vmem>>, vector<1x16xf32>
    %190 = vector.broadcast %189 : vector<1x16xf32> to vector<2x16xf32>
    %191 = arith.addf %188, %190 : vector<2x16xf32>
    %cst_251 = arith.constant 0.000000e+00 : f32
    %192 = vector.broadcast %cst_251 : f32 to vector<2x16xf32>
    %193 = arith.maximumf %191, %192 : vector<2x16xf32>
    %c0_252 = arith.constant 0 : index
    %c0_253 = arith.constant 0 : index
    %194 = vector.load %arg16[%c0_252, %c0_253] : memref<16x8xf32, #tpu.memory_space<vmem>>, vector<16x8xf32>
    %cst_254 = arith.constant dense<0.000000e+00> : vector<2x8xf32>
    %195 = tpu.matmul %193, %194, %cst_254 {dimension_numbers = #tpu.dot_dimension_numbers<[1], [0], [0], [1], [0, 0, 1, 1], [], []>} : vector<2x16xf32>, vector<16x8xf32>, vector<2x8xf32> -> vector<2x8xf32>
    %c0_255 = arith.constant 0 : index
    %c0_256 = arith.constant 0 : index
    %196 = vector.load %arg17[%c0_255, %c0_256] : memref<1x8xf32, #tpu.memory_space<vmem>>, vector<1x8xf32>
    %197 = vector.broadcast %196 : vector<1x8xf32> to vector<2x8xf32>
    %198 = arith.addf %195, %197 : vector<2x8xf32>
    %199 = vector.extract_strided_slice %198 {offsets = [0, 0], sizes = [2, 4], strides = [1, 1]} : vector<2x8xf32> to vector<2x4xf32>
    %c0_257 = arith.constant 0 : index
    %c0_258 = arith.constant 0 : index
    %200 = vector.load %arg18[%c0_257, %c0_258] : memref<2x4xf32, #tpu.memory_space<vmem>>, vector<2x4xf32>
    tpu.vector_store %arg18[%c0_257, %c0_258], %199 {strides = array<i32>} : memref<2x4xf32, #tpu.memory_space<vmem>>, vector<2x4xf32>,
    %201 = vector.extract_strided_slice %198 {offsets = [0, 4], sizes = [2, 4], strides = [1, 1]} : vector<2x8xf32> to vector<2x4xf32>
    %202 = math.exp %201 : vector<2x4xf32>
    %c0_259 = arith.constant 0 : index
    %c0_260 = arith.constant 0 : index
    %203 = vector.load %arg19[%c0_259, %c0_260] : memref<2x4xf32, #tpu.memory_space<vmem>>, vector<2x4xf32>
    tpu.vector_store %arg19[%c0_259, %c0_260], %202 {strides = array<i32>} : memref<2x4xf32, #tpu.memory_space<vmem>>, vector<2x4xf32>,
    return
  }
  func.func @transform_0(%arg0: i32) -> (i32, i32, i32) {
    %c0_i32 = arith.constant 0 : i32
    %c0_i32_0 = arith.constant 0 : i32
    %c0_i32_1 = arith.constant 0 : i32
    return %arg0, %c0_i32, %c0_i32_0 : i32, i32, i32
  }
  func.func @transform_1(%arg0: i32) -> (i32, i32) {
    %c0_i32 = arith.constant 0 : i32
    %c0_i32_0 = arith.constant 0 : i32
    %c0_i32_1 = arith.constant 0 : i32
    return %c0_i32, %c0_i32_0 : i32, i32
  }
  func.func @transform_2(%arg0: i32) -> (i32, i32) {
    %c0_i32 = arith.constant 0 : i32
    %c0_i32_0 = arith.constant 0 : i32
    %c0_i32_1 = arith.constant 0 : i32
    return %c0_i32, %c0_i32_0 : i32, i32
  }
  func.func @transform_3(%arg0: i32) -> (i32, i32) {
    %c0_i32 = arith.constant 0 : i32
    %c0_i32_0 = arith.constant 0 : i32
    %c0_i32_1 = arith.constant 0 : i32
    return %c0_i32, %c0_i32_0 : i32, i32
  }
  func.func @transform_4(%arg0: i32) -> (i32, i32) {
    %c0_i32 = arith.constant 0 : i32
    %c0_i32_0 = arith.constant 0 : i32
    %c0_i32_1 = arith.constant 0 : i32
    return %c0_i32, %c0_i32_0 : i32, i32
  }
  func.func @transform_5(%arg0: i32) -> (i32, i32) {
    %c0_i32 = arith.constant 0 : i32
    %c0_i32_0 = arith.constant 0 : i32
    %c0_i32_1 = arith.constant 0 : i32
    return %c0_i32, %c0_i32_0 : i32, i32
  }
  func.func @transform_6(%arg0: i32) -> (i32, i32) {
    %c0_i32 = arith.constant 0 : i32
    %c0_i32_0 = arith.constant 0 : i32
    %c0_i32_1 = arith.constant 0 : i32
    return %c0_i32, %c0_i32_0 : i32, i32
  }
  func.func @transform_7(%arg0: i32) -> (i32, i32) {
    %c0_i32 = arith.constant 0 : i32
    %c0_i32_0 = arith.constant 0 : i32
    %c0_i32_1 = arith.constant 0 : i32
    return %c0_i32, %c0_i32_0 : i32, i32
  }
  func.func @transform_8(%arg0: i32) -> (i32, i32) {
    %c0_i32 = arith.constant 0 : i32
    %c0_i32_0 = arith.constant 0 : i32
    %c0_i32_1 = arith.constant 0 : i32
    return %c0_i32, %c0_i32_0 : i32, i32
  }
  func.func @transform_9(%arg0: i32) -> (i32, i32) {
    %c0_i32 = arith.constant 0 : i32
    %c0_i32_0 = arith.constant 0 : i32
    %c0_i32_1 = arith.constant 0 : i32
    return %c0_i32, %c0_i32_0 : i32, i32
  }
  func.func @transform_10(%arg0: i32) -> (i32, i32) {
    %c0_i32 = arith.constant 0 : i32
    %c0_i32_0 = arith.constant 0 : i32
    %c0_i32_1 = arith.constant 0 : i32
    return %c0_i32, %c0_i32_0 : i32, i32
  }
  func.func @transform_11(%arg0: i32) -> (i32, i32) {
    %c0_i32 = arith.constant 0 : i32
    %c0_i32_0 = arith.constant 0 : i32
    %c0_i32_1 = arith.constant 0 : i32
    return %c0_i32, %c0_i32_0 : i32, i32
  }
  func.func @transform_12(%arg0: i32) -> (i32, i32) {
    %c0_i32 = arith.constant 0 : i32
    %c0_i32_0 = arith.constant 0 : i32
    %c0_i32_1 = arith.constant 0 : i32
    return %c0_i32, %c0_i32_0 : i32, i32
  }
  func.func @transform_13(%arg0: i32) -> (i32, i32) {
    %c0_i32 = arith.constant 0 : i32
    %c0_i32_0 = arith.constant 0 : i32
    %c0_i32_1 = arith.constant 0 : i32
    return %c0_i32, %c0_i32_0 : i32, i32
  }
  func.func @transform_14(%arg0: i32) -> (i32, i32) {
    %c0_i32 = arith.constant 0 : i32
    %c0_i32_0 = arith.constant 0 : i32
    %c0_i32_1 = arith.constant 0 : i32
    return %c0_i32, %c0_i32_0 : i32, i32
  }
  func.func @transform_15(%arg0: i32) -> (i32, i32) {
    %c0_i32 = arith.constant 0 : i32
    %c0_i32_0 = arith.constant 0 : i32
    %c0_i32_1 = arith.constant 0 : i32
    return %c0_i32, %c0_i32_0 : i32, i32
  }
  func.func @transform_16(%arg0: i32) -> (i32, i32) {
    %c0_i32 = arith.constant 0 : i32
    %c0_i32_0 = arith.constant 0 : i32
    %c0_i32_1 = arith.constant 0 : i32
    return %c0_i32, %c0_i32_0 : i32, i32
  }
  func.func @transform_17(%arg0: i32) -> (i32, i32) {
    %c0_i32 = arith.constant 0 : i32
    %c0_i32_0 = arith.constant 0 : i32
    return %arg0, %c0_i32 : i32, i32
  }
  func.func @transform_18(%arg0: i32) -> (i32, i32) {
    %c0_i32 = arith.constant 0 : i32
    %c0_i32_0 = arith.constant 0 : i32
    return %arg0, %c0_i32 : i32, i32
  }
}

</mosaic_0001>

<bundles_post_ra>
// kernel: bresnet1d_forward.1
= control target key start
LH: loop header
LB: loop body
LE: loop exit
PB: predicated region body
PF: predicated region fallthrough
CT: control target
= control target key end

     0   :  { %s1403_s0 = inlined_call_operand.vmem [shape: f32[2,1,64], index: 0, kind: input, shape index: {}]   ;;  %s1404_s1 = inlined_call_operand.vmem [shape: f32[64,16], index: 1, kind: input, shape index: {}]   ;;  %s1405_s2 = inlined_call_operand.vmem [shape: f32[8,7], index: 2, kind: input, shape index: {}]   ;;  %s1406_s3 = inlined_call_operand.vmem [shape: f32[8,1], index: 3, kind: input, shape index: {}]   ;;  %s1407_s4 = inlined_call_operand.vmem [shape: f32[8,1], index: 4, kind: input, shape index: {}]   ;;  %s1408_s5 = inlined_call_operand.vmem [shape: f32[8,56], index: 5, kind: input, shape index: {}]   ;;  %s1409_s6 = inlined_call_operand.vmem [shape: f32[8,1], index: 6, kind: input, shape index: {}]   ;;  %s1410_s7 = inlined_call_operand.vmem [shape: f32[8,1], index: 7, kind: input, shape index: {}]   ;;  %s1411_s8 = inlined_call_operand.vmem [shape: f32[8,56], index: 8, kind: input, shape index: {}]   ;;  %s1412_s9 = inlined_call_operand.vmem [shape: f32[8,1], index: 9, kind: input, shape index: {}]   ;;  %s1413_s10 = inlined_call_operand.vmem [shape: f32[8,1], index: 10, kind: input, shape index: {}]   ;;  %s1414_s11 = inlined_call_operand.vmem [shape: f32[128,32], index: 11, kind: input, shape index: {}]   ;;  %s1415_s12 = inlined_call_operand.vmem [shape: f32[1,32], index: 12, kind: input, shape index: {}]   ;;  %s1416_s13 = inlined_call_operand.vmem [shape: f32[32,16], index: 13, kind: input, shape index: {}]   ;;  %s1417_s14 = inlined_call_operand.vmem [shape: f32[1,16], index: 14, kind: input, shape index: {}]   ;;  %s1418_s15 = inlined_call_operand.vmem [shape: f32[16,8], index: 15, kind: input, shape index: {}]   ;;  %s1419_s16 = inlined_call_operand.vmem [shape: f32[1,8], index: 16, kind: input, shape index: {}]   ;;  %s1420_s17 = inlined_call_operand.hbm [shape: f32[2,4], index: 17, kind: output, shape index: {0}]   ;;  %s1421_s18 = inlined_call_operand.hbm [shape: f32[2,4], index: 18, kind: output, shape index: {1}]  }
   0x1   :  { %1429 = sst [smem:[#allocation11_spill]] %s1403_s0 }
   0x2   :  { %1430 = sst [smem:[#allocation12_spill]] %s1404_s1 }
   0x3   :  { %1431 = sst [smem:[#allocation13_spill]] %s1405_s2 }
   0x4   :  { %24 = vsyncpa [#allocation6], 0  ;;  %s1432_s29 = sld [smem:[#allocation11_spill]]  ;;  %s972_s30 = smov 3  }
   0xa   :  { %v913_v0 = vld [vmem:[%s1432_s29] ss:$0 sm:$0xff] }
   0xb   :  { %66 = vrot.lane.b32.xlu0 %v913_v0, %s972_s30 }
   0xc   :  { %25 = vsyncpa [#allocation8], 0  ;;  %v914_v1 = vld [vmem:[%s1432_s29 + $0x1] ss:$0 sm:$0xff]  ;;  %s973_s1 = smov 73   ;;  %v974_v2 = vmov 0.0  }
   0xd   :  { %60 = vst [vmem:[#allocation2] sm:$0xff] %v974_v2  ;;  %vm61_vm0 = vcmask 97280   ;;  %vm69_vm1 = vcmask 540696   ;;  %vm78_vm2 = vcmask 1040968   ;;  %vm80_vm3 = vcmask 65536   ;;  %s1424_s20 = smov 127  }
   0xe   :  { %62 = vst.msk [vmem:[#allocation2 + $0x8] sm:$0xff] %vm61_vm0, %v974_v2  ;;  %vm86_vm4 = vcmask 516096   ;;  %s1426_s21 = smov 121   ;;  %s977_s22 = smov 122   ;;  %vm115_vm5 = vcmask 990208   ;;  %vm99_vm6 = vcmask 1040896  }
   0xf   :  { %s978_s2 = smov 120   ;;  %s979_s23 = smov 119   ;;  %vm96_vm7 = vcmask 998400   ;;  %vm133_vm8 = vcmask 982016   ;;  %vm151_vm9 = vcmask 973824   ;;  %v83_v23 = vld [vmem:[%s1406_s3] sm:$0xff] }
  0x10   :  { %s980_s24 = smov 126   ;;  %s981_s25 = smov 118   ;;  %v84_v24 = vld [vmem:[%s1407_s4] sm:$0xff]  ;;  %v987_v26 = vmov 0   ;;  %vm169_vm10 = vcmask 965632   ;;  %vm187_vm11 = vcmask 957440  }
  0x11   :  { %s1428_s26 = smov 125   ;;  %s983_s27 = smov 117   ;;  %910 = vset.pattern.permute.xlu1 %v987_v26  ;;  %911 = vset.pattern.permute.xlu2 %v987_v26  ;;  %vm205_vm12 = vcmask 949248   ;;  %vm214_vm13 = vcmask 1046528   ;;  %vm210_vm14 = vcmask 56320   ;;  %vm264_vm15 = vcmask 72704  }
  0x12   :  { %s984_s28 = smov 124   ;;  %s985_s29 = smov 116   ;;  %912 = vset.pattern.permute.xlu0 %v987_v26  ;;  %v267_v49 = vld [vmem:[%s1409_s6] sm:$0xff] }
  0x13   :  { %75 = vrot.lane.b32.xlu0 %v914_v1, %s973_s1  ;;  %s986_s0 = smov 123   ;;  %s1434_s19 = smov 121   ;;  %v268_v50 = vld [vmem:[%s1410_s7] sm:$0xff] }
  0x14   :  { %s1435_s1 = smov 127  }
  0x7d   :  { %v67_v3 = vpop.permute.xlu0 %66 }
  0x7e   :  { %70 = vst.msk [vmem:[#allocation2] sm:$0x1] %vm69_vm1, %v67_v3  ;;  %vm257_vm1 = vcmask 547864  }
  0x85   :  { %v76_v4 = vpop.permute.xlu0 %75 }
  0x86   :  { %79 = vst.msk [vmem:[#allocation2] sm:$0x1] %vm78_vm2, %v76_v4  ;;  %vm262_vm2 = vcmask 1048136  }
  0x87   :  { %81 = vst.msk [vmem:[#allocation2 + $0x8] sm:$0x1] %vm80_vm3, %v76_v4  ;;  %vm270_vm3 = vcmask 523264  }
  0x8d   :  { %v101_v5 = vld [vmem:[#allocation2] ss:$0 sm:$0xff] }
  0x8e   :  { %v108_v6 = vld [vmem:[#allocation2 + $0x8] ss:$0 sm:$0xff]  ;;  %103 = vrot.lane.b32.xlu2 %v101_v5, %s1424_s20  ;;  %87 = vst.msk [vmem:[#allocation3] sm:$0x1] %vm86_vm4, %v101_v5  ;;  %s1433_s20 = sld [smem:[#allocation13_spill]] }
  0x8f   :  { %113 = vrot.lane.b32.xlu0 %v108_v6, %s1426_s21  ;;  %94 = vrot.lane.b32.xlu1 %v108_v6, %s977_s22  ;;  %252 = vst.msk [vmem:[#allocation2 + $0x8] sm:$0xff] %vm61_vm0, %v974_v2 }
  0x90   :  { %251 = vst [vmem:[#allocation2] sm:$0xff] %v974_v2 }
  0x94   :  { %v82_v37 = vld [vmem:[%s1433_s20] sm:$0xff]  ;;  %s861_s20 = sshll.u32 %s1421_s18, 4  ;;  %s862_s20 = int_to_ptr.hbm [resolvable:$true] %s861_s20 }
  0x96   :  { %111 = vrot.lane.b32.xlu2 %v101_v5, %s1426_s21  ;;  %s988_s21 = smov 9  }
  0x97   :  { %131 = vrot.lane.b32.xlu0 %v108_v6, %s978_s2  ;;  %92 = vrot.lane.b32.xlu1 %v101_v5, %s977_s22 }
  0x9e   :  { %129 = vrot.lane.b32.xlu2 %v101_v5, %s978_s2 }
  0x9f   :  { %149 = vrot.lane.b32.xlu0 %v108_v6, %s979_s23  ;;  %121 = vrot.lane.b32.xlu1 %v101_v5, %s980_s24 }
  0xa6   :  { %147 = vrot.lane.b32.xlu2 %v101_v5, %s979_s23 }
  0xa7   :  { %167 = vrot.lane.b32.xlu0 %v108_v6, %s981_s25  ;;  %139 = vrot.lane.b32.xlu1 %v101_v5, %s1428_s26 }
  0xae   :  { %165 = vrot.lane.b32.xlu2 %v101_v5, %s981_s25 }
  0xaf   :  { %185 = vrot.lane.b32.xlu0 %v108_v6, %s983_s27  ;;  %157 = vrot.lane.b32.xlu1 %v101_v5, %s984_s28 }
  0xb6   :  { %183 = vrot.lane.b32.xlu2 %v101_v5, %s983_s27 }
  0xb7   :  { %203 = vrot.lane.b32.xlu0 %v108_v6, %s985_s29  ;;  %175 = vrot.lane.b32.xlu1 %v101_v5, %s986_s0 }
  0xbe   :  { %201 = vrot.lane.b32.xlu2 %v101_v5, %s985_s29 }
  0xbf   :  { %193 = vrot.lane.b32.xlu1 %v101_v5, %s977_s22 }
  0xc6   :  { %246 = vperm.xlu2 %911, %v84_v24  }
  0xc7   :  { %240 = vperm.xlu1 %910, %v83_v23  }
  0xe8   :  { %v104_v7 = vpop.permute.xlu2 %103 }
  0xe9   :  { %106 = vst.msk [vmem:[#allocation3 + $0x1] sm:$0x1] %vm86_vm4, %v104_v7 }
  0xf0   :  { %v112_v8 = vpop.permute.xlu2 %111 }
  0xf8   :  { %v130_v12 = vpop.permute.xlu2 %129 }
 0x100   :  { %v148_v19 = vpop.permute.xlu2 %147 }
 0x101   :  { %v114_v9 = vpop.permute.xlu0 %113  ;;  %v95_v10 = vpop.permute.xlu1 %94 }
 0x102   :  { %v116_v11 = vsel %vm115_vm5, %v112_v8, %v114_v9 }
 0x103   :  { %118 = vst.msk [vmem:[#allocation3 + $0x1] sm:$0x1] %vm99_vm6, %v116_v11 }
 0x108   :  { %v166_v25 = vpop.permute.xlu2 %165 }
 0x109   :  { %v132_v13 = vpop.permute.xlu0 %131  ;;  %v93_v14 = vpop.permute.xlu1 %92 }
 0x10a   :  { %v97_v15 = vsel %vm96_vm7, %v93_v14, %v95_v10  ;;  %v134_v18 = vsel %vm133_vm8, %v130_v12, %v132_v13 }
 0x10b   :  { %100 = vst.msk [vmem:[#allocation3] sm:$0x1] %vm99_vm6, %v97_v15 }
 0x110   :  { %v184_v30 = vpop.permute.xlu2 %183 }
 0x111   :  { %v150_v16 = vpop.permute.xlu0 %149  ;;  %v122_v17 = vpop.permute.xlu1 %121 }
 0x112   :  { %124 = vst.msk [vmem:[#allocation3 + $0x2] sm:$0x1] %vm86_vm4, %v122_v17  ;;  %v152_v21 = vsel %vm151_vm9, %v148_v19, %v150_v16 }
 0x113   :  { %136 = vst.msk [vmem:[#allocation3 + $0x2] sm:$0x1] %vm99_vm6, %v134_v18 }
 0x118   :  { %v202_v34 = vpop.permute.xlu2 %201 }
 0x119   :  { %v140_v20 = vpop.permute.xlu1 %139  ;;  %v168_v22 = vpop.permute.xlu0 %167 }
 0x11a   :  { %142 = vst.msk [vmem:[#allocation3 + $0x3] sm:$0x1] %vm86_vm4, %v140_v20  ;;  %v170_v28 = vsel %vm169_vm10, %v166_v25, %v168_v22  ;;  %v266_v20 = vld [vmem:[%s1408_s5] sm:$0xff]  ;;  %s1436_s5 = smov 125  }
 0x11b   :  { %154 = vst.msk [vmem:[#allocation3 + $0x3] sm:$0x1] %vm99_vm6, %v152_v21 }
 0x120   :  { %v247_v41 = vpop.permute.xlu2 %246 }
 0x121   :  { %v158_v27 = vpop.permute.xlu1 %157  ;;  %v186_v29 = vpop.permute.xlu0 %185 }
 0x122   :  { %160 = vst.msk [vmem:[#allocation3 + $0x4] sm:$0x1] %vm86_vm4, %v158_v27  ;;  %v188_v32 = vsel %vm187_vm11, %v184_v30, %v186_v29 }
 0x123   :  { %172 = vst.msk [vmem:[#allocation3 + $0x4] sm:$0x1] %vm99_vm6, %v170_v28 }
 0x129   :  { %v176_v31 = vpop.permute.xlu1 %175  ;;  %v204_v33 = vpop.permute.xlu0 %203 }
 0x12a   :  { %178 = vst.msk [vmem:[#allocation3 + $0x5] sm:$0x1] %vm86_vm4, %v176_v31  ;;  %v206_v36 = vsel %vm205_vm12, %v202_v34, %v204_v33  ;;  %v444_v33 = vld [vmem:[%s1413_s10] sm:$0xff]  ;;  %s993_s10 = smov 96  }
 0x12b   :  { %190 = vst.msk [vmem:[#allocation3 + $0x5] sm:$0x1] %vm99_vm6, %v188_v32  ;;  %v443_v32 = vld [vmem:[%s1412_s9] sm:$0xff]  ;;  %s992_s9 = smov 16  }
 0x131   :  { %v194_v35 = vpop.permute.xlu1 %193 }
 0x132   :  { %196 = vst.msk [vmem:[#allocation3 + $0x6] sm:$0x1] %vm86_vm4, %v194_v35  ;;  %vm393_vm4 = vcmask 457728  }
 0x133   :  { %208 = vst.msk [vmem:[#allocation3 + $0x6] sm:$0x1] %vm99_vm6, %v206_v36  ;;  %vm642_vm6 = vcmask 255105  }
 0x139   :  { %v241_v39 = vpop.permute.xlu1 %240 }
 0x13a   :  { %v209_v38 = vld [vmem:[#allocation3] sm:$0x7f] }
 0x13b   :  { %876 = vmatpush.msk.msra.mxu2 %vm214_vm13, %v209_v38  ;;  %vm779_vm13 = vcmask 261120  }
 0x13c   :  { %877 = vmatmul.msk.f32.vlgmr.msra.gmra.mxu2 %vm210_vm14, %v82_v37  ;;  %vm810_vm14 = vcmask 130048  }
 0x1bf   :  { %v235_v40 = vpop.f32.mrf.mxu2 }
 0x1c0   :  { %v243_v42 = vmul.f32 %v241_v39, %v235_v40 }
 0x1c2   :  { %v249_v43 = vadd.f32 %v247_v41, %v243_v42 }
 0x1c4   :  { %v1156_v44 = vmax.f32 %v249_v43, 0.0 }
 0x1c6   :  { %259 = vrot.lane.b32.xlu1 %v1156_v44, %s988_s21  ;;  %254 = vrot.lane.b32.xlu0 %v1156_v44, %s972_s30 }
 0x238   :  { %v260_v45 = vpop.permute.xlu1 %259  ;;  %v255_v46 = vpop.permute.xlu0 %254 }
 0x239   :  { %265 = vst.msk [vmem:[#allocation2 + $0x8] sm:$0xff] %vm264_vm15, %v260_v45 }
 0x23a   :  { %258 = vst.msk [vmem:[#allocation2] sm:$0xff] %vm257_vm1, %v255_v46 }
 0x23b   :  { %263 = vst.msk [vmem:[#allocation2] sm:$0xff] %vm262_vm2, %v260_v45 }
 0x240   :  { %v376_v47 = vld [vmem:[#allocation2 + $0x8] sm:$0xff] }
 0x241   :  { %381 = vrot.lane.b32.xlu1 %v376_v47, %s985_s29  ;;  %431 = vst.msk [vmem:[#allocation2 + $0x8] sm:$0xff] %vm61_vm0, %v974_v2  ;;  %vm282_vm0 = vcmask 1048064  }
 0x242   :  { %v375_v48 = vld [vmem:[#allocation2] sm:$0xff] }
 0x243   :  { %379 = vrot.lane.b32.xlu0 %v375_v48, %s985_s29  ;;  %371 = vrot.lane.b32.xlu2 %v375_v48, %s977_s22  ;;  %271 = vst.msk [vmem:[#allocation3] sm:$0xff] %vm270_vm3, %v375_v48 }
 0x244   :  { %430 = vst [vmem:[#allocation2] sm:$0xff] %v974_v2 }
 0x249   :  { %364 = vrot.lane.b32.xlu1 %v376_v47, %s983_s27 }
 0x24b   :  { %362 = vrot.lane.b32.xlu0 %v375_v48, %s983_s27  ;;  %354 = vrot.lane.b32.xlu2 %v375_v48, %s986_s0 }
 0x251   :  { %347 = vrot.lane.b32.xlu1 %v376_v47, %s981_s25 }
 0x253   :  { %345 = vrot.lane.b32.xlu0 %v375_v48, %s981_s25  ;;  %337 = vrot.lane.b32.xlu2 %v375_v48, %s984_s28 }
 0x259   :  { %330 = vrot.lane.b32.xlu1 %v376_v47, %s979_s23 }
 0x25b   :  { %328 = vrot.lane.b32.xlu0 %v375_v48, %s979_s23  ;;  %320 = vrot.lane.b32.xlu2 %v375_v48, %s1428_s26  ;;  %s991_s26 = smov 32  }
 0x261   :  { %313 = vrot.lane.b32.xlu1 %v376_v47, %s978_s2 }
 0x263   :  { %311 = vrot.lane.b32.xlu0 %v375_v48, %s978_s2  ;;  %303 = vrot.lane.b32.xlu2 %v375_v48, %s980_s24 }
 0x269   :  { %296 = vrot.lane.b32.xlu1 %v376_v47, %s1434_s19 }
 0x26b   :  { %294 = vrot.lane.b32.xlu0 %v375_v48, %s1434_s19  ;;  %286 = vrot.lane.b32.xlu2 %v375_v48, %s1435_s1 }
 0x271   :  { %419 = vperm.xlu1 %910, %v267_v49  }
 0x273   :  { %278 = vrot.lane.b32.xlu0 %v376_v47, %s977_s22  ;;  %276 = vrot.lane.b32.xlu2 %v375_v48, %s977_s22 }
 0x27b   :  { %425 = vperm.xlu2 %911, %v268_v50  }
 0x29d   :  { %v372_v51 = vpop.permute.xlu2 %371 }
 0x29e   :  { %374 = vst.msk [vmem:[#allocation3 + $0x30] sm:$0xff] %vm270_vm3, %v372_v51 }
 0x2a5   :  { %v355_v52 = vpop.permute.xlu2 %354 }
 0x2a6   :  { %357 = vst.msk [vmem:[#allocation3 + $0x28] sm:$0xff] %vm270_vm3, %v355_v52 }
 0x2ad   :  { %v338_v53 = vpop.permute.xlu2 %337 }
 0x2ae   :  { %340 = vst.msk [vmem:[#allocation3 + $0x20] sm:$0xff] %vm270_vm3, %v338_v53 }
 0x2b3   :  { %v382_v54 = vpop.permute.xlu1 %381 }
 0x2b5   :  { %v380_v55 = vpop.permute.xlu0 %379  ;;  %v321_v56 = vpop.permute.xlu2 %320 }
 0x2b6   :  { %v383_v57 = vsel %vm205_vm12, %v380_v55, %v382_v54  ;;  %323 = vst.msk [vmem:[#allocation3 + $0x18] sm:$0xff] %vm270_vm3, %v321_v56 }
 0x2b7   :  { %385 = vst.msk [vmem:[#allocation3 + $0x30] sm:$0xff] %vm282_vm0, %v383_v57 }
 0x2bb   :  { %v365_v58 = vpop.permute.xlu1 %364 }
 0x2bd   :  { %v363_v59 = vpop.permute.xlu0 %362  ;;  %v304_v60 = vpop.permute.xlu2 %303 }
 0x2be   :  { %v366_v61 = vsel %vm187_vm11, %v363_v59, %v365_v58  ;;  %306 = vst.msk [vmem:[#allocation3 + $0x10] sm:$0xff] %vm270_vm3, %v304_v60  ;;  %v392_v62 = vld [vmem:[#allocation3 + $0x30] sm:$0xff] }
 0x2bf   :  { %368 = vst.msk [vmem:[#allocation3 + $0x28] sm:$0xff] %vm282_vm0, %v366_v61  ;;  %406 = vmatpush.msra.mxu0 %v392_v62 }
 0x2c3   :  { %v348_v63 = vpop.permute.xlu1 %347 }
 0x2c5   :  { %v346_v0 = vpop.permute.xlu0 %345  ;;  %v287_v1 = vpop.permute.xlu2 %286 }
 0x2c6   :  { %v349_v2 = vsel %vm169_vm10, %v346_v0, %v348_v63  ;;  %289 = vst.msk [vmem:[#allocation3 + $0x8] sm:$0xff] %vm270_vm3, %v287_v1  ;;  %v391_v3 = vld [vmem:[#allocation3 + $0x28] sm:$0xff] }
 0x2c7   :  { %351 = vst.msk [vmem:[#allocation3 + $0x20] sm:$0xff] %vm282_vm0, %v349_v2  ;;  %407 = vmatpush.msra.mxu0 %v391_v3 }
 0x2cb   :  { %v331_v4 = vpop.permute.xlu1 %330 }
 0x2cd   :  { %v329_v5 = vpop.permute.xlu0 %328  ;;  %v277_v16 = vpop.permute.xlu2 %276 }
 0x2ce   :  { %v332_v6 = vsel %vm151_vm9, %v329_v5, %v331_v4  ;;  %v390_v7 = vld [vmem:[#allocation3 + $0x20] sm:$0xff] }
 0x2cf   :  { %334 = vst.msk [vmem:[#allocation3 + $0x18] sm:$0xff] %vm282_vm0, %v332_v6  ;;  %408 = vmatpush.msra.mxu0 %v390_v7  ;;  %v442_v7 = vld [vmem:[%s1411_s8] sm:$0xff] }
 0x2d3   :  { %v314_v8 = vpop.permute.xlu1 %313 }
 0x2d5   :  { %v312_v9 = vpop.permute.xlu0 %311  ;;  %v426_v25 = vpop.permute.xlu2 %425 }
 0x2d6   :  { %v315_v10 = vsel %vm133_vm8, %v312_v9, %v314_v8  ;;  %v389_v11 = vld [vmem:[#allocation3 + $0x18] sm:$0xff] }
 0x2d7   :  { %317 = vst.msk [vmem:[#allocation3 + $0x10] sm:$0xff] %vm282_vm0, %v315_v10  ;;  %409 = vmatpush.msra.mxu0 %v389_v11 }
 0x2db   :  { %v297_v12 = vpop.permute.xlu1 %296 }
 0x2dd   :  { %v295_v13 = vpop.permute.xlu0 %294 }
 0x2de   :  { %v298_v14 = vsel %vm115_vm5, %v295_v13, %v297_v12  ;;  %v388_v15 = vld [vmem:[#allocation3 + $0x10] sm:$0xff] }
 0x2df   :  { %300 = vst.msk [vmem:[#allocation3 + $0x8] sm:$0xff] %vm282_vm0, %v298_v14  ;;  %410 = vmatpush.msra.mxu0 %v388_v15 }
 0x2e3   :  { %v420_v22 = vpop.permute.xlu1 %419 }
 0x2e5   :  { %v279_v17 = vpop.permute.xlu0 %278 }
 0x2e6   :  { %v280_v18 = vsel %vm96_vm7, %v277_v16, %v279_v17  ;;  %v387_v19 = vld [vmem:[#allocation3 + $0x8] sm:$0xff] }
 0x2e7   :  { %283 = vst.msk [vmem:[#allocation3] sm:$0xff] %vm282_vm0, %v280_v18  ;;  %411 = vmatpush.msra.mxu0 %v387_v19 }
 0x2ee   :  { %v386_v21 = vld [vmem:[#allocation3] sm:$0xff] }
 0x2ef   :  { %412 = vmatpush.msra.mxu0 %v386_v21 }
 0x2f0   :  { %878 = vmatmul.msk.f32.vlgmr.msra.gmra.mxu0 %vm393_vm4, %v266_v20 }
 0x36d   :  { %v414_v23 = vpop.f32.mrf.mxu0 }
 0x36e   :  { %v422_v24 = vmul.f32 %v420_v22, %v414_v23 }
 0x370   :  { %v428_v26 = vadd.f32 %v426_v25, %v422_v24 }
 0x372   :  { %v429_v27 = vmax.f32 %v428_v26, 0.0 }
 0x374   :  { %437 = vrot.lane.b32.xlu1 %v429_v27, %s988_s21  ;;  %433 = vrot.lane.b32.xlu0 %v429_v27, %s972_s30 }
 0x3e6   :  { %v438_v28 = vpop.permute.xlu1 %437  ;;  %v434_v29 = vpop.permute.xlu0 %433 }
 0x3e7   :  { %441 = vst.msk [vmem:[#allocation2 + $0x8] sm:$0xff] %vm264_vm15, %v438_v28  ;;  %vm834_vm15 = vcmask 25600  }
 0x3e8   :  { %436 = vst.msk [vmem:[#allocation2] sm:$0xff] %vm257_vm1, %v434_v29 }
 0x3e9   :  { %440 = vst.msk [vmem:[#allocation2] sm:$0xff] %vm262_vm2, %v438_v28 }
 0x3ee   :  { %v550_v30 = vld [vmem:[#allocation2 + $0x8] sm:$0xff] }
 0x3ef   :  { %555 = vrot.lane.b32.xlu1 %v550_v30, %s985_s29 }
 0x3f0   :  { %v549_v31 = vld [vmem:[#allocation2] sm:$0xff] }
 0x3f1   :  { %553 = vrot.lane.b32.xlu0 %v549_v31, %s985_s29  ;;  %545 = vrot.lane.b32.xlu2 %v549_v31, %s977_s22  ;;  %446 = vst.msk [vmem:[#allocation3] sm:$0xff] %vm270_vm3, %v549_v31 }
 0x3f7   :  { %538 = vrot.lane.b32.xlu1 %v550_v30, %s983_s27 }
 0x3f9   :  { %536 = vrot.lane.b32.xlu0 %v549_v31, %s983_s27  ;;  %528 = vrot.lane.b32.xlu2 %v549_v31, %s986_s0  ;;  %s996_s0 = smov [#allocation5]  }
 0x3fa   :  { %s848_s21 = sshll.u32 %s996_s0, 4  ;;  %s849_s21 = int_to_ptr.vmem [resolvable:$true] %s848_s21 }
 0x3ff   :  { %521 = vrot.lane.b32.xlu1 %v550_v30, %s981_s25 }
 0x401   :  { %519 = vrot.lane.b32.xlu0 %v549_v31, %s981_s25  ;;  %511 = vrot.lane.b32.xlu2 %v549_v31, %s984_s28  ;;  %s989_s25 = smov 64  }
 0x407   :  { %504 = vrot.lane.b32.xlu1 %v550_v30, %s979_s23 }
 0x409   :  { %502 = vrot.lane.b32.xlu0 %v549_v31, %s979_s23  ;;  %494 = vrot.lane.b32.xlu2 %v549_v31, %s1436_s5  ;;  %s990_s23 = smov 48  }
 0x40f   :  { %487 = vrot.lane.b32.xlu1 %v550_v30, %s978_s2 }
 0x411   :  { %485 = vrot.lane.b32.xlu0 %v549_v31, %s978_s2  ;;  %477 = vrot.lane.b32.xlu2 %v549_v31, %s980_s24  ;;  %s995_s2 = smov 112  }
 0x417   :  { %470 = vrot.lane.b32.xlu1 %v550_v30, %s1434_s19 }
 0x419   :  { %468 = vrot.lane.b32.xlu0 %v549_v31, %s1434_s19  ;;  %460 = vrot.lane.b32.xlu2 %v549_v31, %s1435_s1 }
 0x41f   :  { %592 = vperm.xlu1 %910, %v443_v32   ;;  %v744_v32 = vld [vmem:[%s1414_s11 + $0x70] sm:$0xff] }
 0x421   :  { %453 = vrot.lane.b32.xlu0 %v550_v30, %s977_s22  ;;  %451 = vrot.lane.b32.xlu2 %v549_v31, %s977_s22  ;;  %s1437_s22 = sld [smem:[#allocation12_spill]]  ;;  %v745_v31 = vld [vmem:[%s1414_s11 + $0x78] sm:$0xff] }
 0x422   :  { %750 = vmatpush.msra.mxu1 %v745_v31 }
 0x424   :  { %751 = vmatpush.msra.mxu1 %v744_v32 }
 0x427   :  { %v611_v56 = vld [vmem:[%s1437_s22 + $0x38] sm:$0xff]  ;;  %v610_v57 = vld [vmem:[%s1437_s22 + $0x30] sm:$0xff]  ;;  %v609_v58 = vld [vmem:[%s1437_s22 + $0x28] sm:$0xff] }
 0x428   :  { %623 = vmatpush.msra.mxu3 %v611_v56  ;;  %686 = vmatpush.msrb.mxu0 %v611_v56  ;;  %v608_v9 = vld [vmem:[%s1437_s22 + $0x20] sm:$0xff]  ;;  %v607_v10 = vld [vmem:[%s1437_s22 + $0x18] sm:$0xff]  ;;  %v606_v11 = vld [vmem:[%s1437_s22 + $0x10] sm:$0xff] }
 0x429   :  { %598 = vperm.xlu2 %911, %v444_v33   ;;  %v605_v12 = vld [vmem:[%s1437_s22 + $0x8] sm:$0xff]  ;;  %v604_v13 = vld [vmem:[%s1437_s22] sm:$0xff]  ;;  %s994_s22 = smov 80  }
 0x42a   :  { %624 = vmatpush.msra.mxu3 %v610_v57  ;;  %687 = vmatpush.msrb.mxu0 %v610_v57  ;;  %v743_v33 = vld [vmem:[%s1414_s11 + $0x68] sm:$0xff] }
 0x42b   :  { %752 = vmatpush.msra.mxu1 %v743_v33 }
 0x42c   :  { %625 = vmatpush.msra.mxu3 %v609_v58  ;;  %688 = vmatpush.msrb.mxu0 %v609_v58 }
 0x42e   :  { %626 = vmatpush.msra.mxu3 %v608_v9  ;;  %689 = vmatpush.msrb.mxu0 %v608_v9 }
 0x430   :  { %627 = vmatpush.msra.mxu3 %v607_v10  ;;  %690 = vmatpush.msrb.mxu0 %v607_v10 }
 0x432   :  { %628 = vmatpush.msra.mxu3 %v606_v11  ;;  %691 = vmatpush.msrb.mxu0 %v606_v11 }
 0x434   :  { %629 = vmatpush.msra.mxu3 %v605_v12  ;;  %692 = vmatpush.msrb.mxu0 %v605_v12 }
 0x436   :  { %630 = vmatpush.msra.mxu3 %v604_v13  ;;  %693 = vmatpush.msrb.mxu0 %v604_v13 }
 0x44b   :  { %v546_v34 = vpop.permute.xlu2 %545 }
 0x44c   :  { %548 = vst.msk [vmem:[#allocation3 + $0x30] sm:$0xff] %vm270_vm3, %v546_v34  ;;  %v742_v34 = vld [vmem:[%s1414_s11 + $0x60] sm:$0xff] }
 0x44d   :  { %753 = vmatpush.msra.mxu1 %v742_v34 }
 0x453   :  { %v529_v35 = vpop.permute.xlu2 %528 }
 0x454   :  { %531 = vst.msk [vmem:[#allocation3 + $0x28] sm:$0xff] %vm270_vm3, %v529_v35  ;;  %v741_v35 = vld [vmem:[%s1414_s11 + $0x58] sm:$0xff] }
 0x455   :  { %754 = vmatpush.msra.mxu1 %v741_v35 }
 0x45b   :  { %v512_v36 = vpop.permute.xlu2 %511 }
 0x45c   :  { %514 = vst.msk [vmem:[#allocation3 + $0x20] sm:$0xff] %vm270_vm3, %v512_v36  ;;  %v740_v36 = vld [vmem:[%s1414_s11 + $0x50] sm:$0xff] }
 0x45d   :  { %755 = vmatpush.msra.mxu1 %v740_v36 }
 0x461   :  { %v556_v37 = vpop.permute.xlu1 %555 }
 0x463   :  { %v554_v38 = vpop.permute.xlu0 %553  ;;  %v495_v39 = vpop.permute.xlu2 %494 }
 0x464   :  { %v557_v40 = vsel %vm205_vm12, %v554_v38, %v556_v37  ;;  %497 = vst.msk [vmem:[#allocation3 + $0x18] sm:$0xff] %vm270_vm3, %v495_v39  ;;  %v739_v37 = vld [vmem:[%s1414_s11 + $0x48] sm:$0xff]  ;;  %v738_v38 = vld [vmem:[%s1414_s11 + $0x40] sm:$0xff]  ;;  %vm672_vm12 = vcmask 1048455  }
 0x465   :  { %559 = vst.msk [vmem:[#allocation3 + $0x30] sm:$0xff] %vm282_vm0, %v557_v40  ;;  %756 = vmatpush.msra.mxu1 %v739_v37  ;;  %v737_v40 = vld [vmem:[%s1414_s11 + $0x38] sm:$0xff] }
 0x467   :  { %757 = vmatpush.msra.mxu1 %v738_v38 }
 0x469   :  { %v539_v41 = vpop.permute.xlu1 %538  ;;  %758 = vmatpush.msra.mxu1 %v737_v40 }
 0x46b   :  { %v537_v42 = vpop.permute.xlu0 %536  ;;  %v478_v43 = vpop.permute.xlu2 %477 }
 0x46c   :  { %v540_v45 = vsel %vm187_vm11, %v537_v42, %v539_v41  ;;  %480 = vst.msk [vmem:[#allocation3 + $0x10] sm:$0xff] %vm270_vm3, %v478_v43  ;;  %v566_v46 = vld [vmem:[#allocation3 + $0x30] sm:$0xff]  ;;  %vm667_vm11 = vcmask 916230   ;;  %v736_v41 = vld [vmem:[%s1414_s11 + $0x30] sm:$0xff]  ;;  %v735_v42 = vld [vmem:[%s1414_s11 + $0x28] sm:$0xff] }
 0x46d   :  { %542 = vst.msk [vmem:[#allocation3 + $0x28] sm:$0xff] %vm282_vm0, %v540_v45  ;;  %579 = vmatpush.msrb.mxu2 %v566_v46  ;;  %759 = vmatpush.msra.mxu1 %v736_v41  ;;  %v734_v43 = vld [vmem:[%s1414_s11 + $0x20] sm:$0xff]  ;;  %v733_v45 = vld [vmem:[%s1414_s11 + $0x18] sm:$0xff]  ;;  %v732_v46 = vld [vmem:[%s1414_s11 + $0x10] sm:$0xff] }
 0x46f   :  { %760 = vmatpush.msra.mxu1 %v735_v42 }
 0x471   :  { %v522_v47 = vpop.permute.xlu1 %521  ;;  %761 = vmatpush.msra.mxu1 %v734_v43 }
 0x473   :  { %v520_v48 = vpop.permute.xlu0 %519  ;;  %v461_v49 = vpop.permute.xlu2 %460  ;;  %762 = vmatpush.msra.mxu1 %v733_v45 }
 0x474   :  { %v523_v50 = vsel %vm169_vm10, %v520_v48, %v522_v47  ;;  %463 = vst.msk [vmem:[#allocation3 + $0x8] sm:$0xff] %vm270_vm3, %v461_v49  ;;  %v565_v51 = vld [vmem:[#allocation3 + $0x28] sm:$0xff]  ;;  %vm662_vm10 = vcmask 784005   ;;  %v731_v47 = vld [vmem:[%s1414_s11 + $0x8] sm:$0xff]  ;;  %v730_v48 = vld [vmem:[%s1414_s11] sm:$0xff] }
 0x475   :  { %525 = vst.msk [vmem:[#allocation3 + $0x20] sm:$0xff] %vm282_vm0, %v523_v50  ;;  %580 = vmatpush.msrb.mxu2 %v565_v51  ;;  %763 = vmatpush.msra.mxu1 %v732_v46  ;;  %v774_v49 = vld [vmem:[%s1416_s13 + $0x18] sm:$0xff]  ;;  %v773_v50 = vld [vmem:[%s1416_s13 + $0x10] sm:$0xff] }
 0x477   :  { %764 = vmatpush.msra.mxu1 %v731_v47 }
 0x479   :  { %v505_v52 = vpop.permute.xlu1 %504  ;;  %765 = vmatpush.msra.mxu1 %v730_v48 }
 0x47b   :  { %v503_v53 = vpop.permute.xlu0 %502  ;;  %v452_v3 = vpop.permute.xlu2 %451 }
 0x47c   :  { %v506_v54 = vsel %vm151_vm9, %v503_v53, %v505_v52  ;;  %v564_v55 = vld [vmem:[#allocation3 + $0x20] sm:$0xff]  ;;  %vm657_vm9 = vcmask 651780  }
 0x47d   :  { %508 = vst.msk [vmem:[#allocation3 + $0x18] sm:$0xff] %vm282_vm0, %v506_v54  ;;  %581 = vmatpush.msrb.mxu2 %v564_v55 }
 0x481   :  { %v488_v59 = vpop.permute.xlu1 %487 }
 0x483   :  { %v486_v60 = vpop.permute.xlu0 %485  ;;  %v599_v17 = vpop.permute.xlu2 %598 }
 0x484   :  { %v489_v61 = vsel %vm133_vm8, %v486_v60, %v488_v59  ;;  %v563_v62 = vld [vmem:[#allocation3 + $0x18] sm:$0xff]  ;;  %vm652_vm8 = vcmask 519555   ;;  %v771_v60 = vld [vmem:[%s1416_s13] sm:$0xff] }
 0x485   :  { %491 = vst.msk [vmem:[#allocation3 + $0x10] sm:$0xff] %vm282_vm0, %v489_v61  ;;  %582 = vmatpush.msrb.mxu2 %v563_v62  ;;  %v772_v59 = vld [vmem:[%s1416_s13 + $0x8] sm:$0xff]  ;;  %v915_v62 = vld [vmem:[%s1415_s12] ss:$0 sm:$0xff] }
 0x486   :  { %v805_v61 = vld [vmem:[%s1418_s15 + $0x8] sm:$0xff] }
 0x487   :  { %828 = vmatpush.msrb.mxu3 %v805_v61 }
 0x489   :  { %v471_v63 = vpop.permute.xlu1 %470 }
 0x48b   :  { %v469_v0 = vpop.permute.xlu0 %468 }
 0x48c   :  { %v472_v1 = vsel %vm115_vm5, %v469_v0, %v471_v63  ;;  %v562_v2 = vld [vmem:[#allocation3 + $0x10] sm:$0xff]  ;;  %vm636_vm5 = vcmask 122880  }
 0x48d   :  { %474 = vst.msk [vmem:[#allocation3 + $0x8] sm:$0xff] %vm282_vm0, %v472_v1  ;;  %583 = vmatpush.msrb.mxu2 %v562_v2  ;;  %v804_v2 = vld [vmem:[%s1418_s15] sm:$0xff]  ;;  %s850_s15 = sshll.u32 %s1420_s17, 4  ;;  %s851_s15 = int_to_ptr.hbm [resolvable:$true] %s850_s15 }
 0x48e   :  { %829 = vmatpush.msrb.mxu3 %v804_v2 }
 0x491   :  { %v593_v14 = vpop.permute.xlu1 %592 }
 0x493   :  { %v454_v4 = vpop.permute.xlu0 %453 }
 0x494   :  { %v455_v5 = vsel %vm96_vm7, %v452_v3, %v454_v4  ;;  %v561_v6 = vld [vmem:[#allocation3 + $0x8] sm:$0xff]  ;;  %vm647_vm7 = vcmask 387330   ;;  %v916_v3 = vld [vmem:[%s1417_s14] ss:$0 sm:$0xff]  ;;  %s997_s14 = smov [#allocation7]  }
 0x495   :  { %457 = vst.msk [vmem:[#allocation3] sm:$0xff] %vm282_vm0, %v455_v5  ;;  %584 = vmatpush.msrb.mxu2 %v561_v6 }
 0x49c   :  { %v560_v8 = vld [vmem:[#allocation3] sm:$0xff] }
 0x49d   :  { %585 = vmatpush.msrb.mxu2 %v560_v8 }
 0x49e   :  { %879 = vmatmul.msk.f32.vlgmr.msrb.gmra.mxu2 %vm393_vm4, %v442_v7  ;;  %v917_v7 = vld [vmem:[%s1419_s16] ss:$0 sm:$0xff]  ;;  %s859_s16 = sshll.u32 %s997_s14, 4  ;;  %s860_s16 = int_to_ptr.vmem [resolvable:$true] %s859_s16 }
 0x49f   :  { %795 = vmatpush.msra.mxu2 %v774_v49 }
 0x4a1   :  { %796 = vmatpush.msra.mxu2 %v773_v50 }
 0x4a3   :  { %797 = vmatpush.msra.mxu2 %v772_v59 }
 0x4a5   :  { %798 = vmatpush.msra.mxu2 %v771_v60 }
 0x521   :  { %v587_v15 = vpop.f32.mrf.mxu2 }
 0x522   :  { %v595_v16 = vmul.f32 %v593_v14, %v587_v15 }
 0x524   :  { %v601_v18 = vadd.f32 %v599_v17, %v595_v16 }
 0x526   :  { %v602_v19 = vadd.f32 %v601_v18, %v1156_v44 }
 0x528   :  { %v603_v20 = vmax.f32 %v602_v19, 0.0 }
 0x52a   :  { %674 = vrot.lane.b32.xlu0 %v603_v20, %s989_s25  ;;  %880 = vmatmul.msk.f32.vlgmr.msra.gmra.mxu3 %vm270_vm3, %v603_v20 }
 0x59c   :  { %v675_v21 = vpop.permute.xlu0 %674 }
 0x59d   :  { %881 = vmatmul.msk.f32.vlgmr.msrb.gmra.mxu0 %vm270_vm3, %v675_v21 }
 0x5ad   :  { %v632_v22 = vpop.f32.mrf.mxu3 }
 0x5ae   :  { %v635_v23 = vmax.f32 %v632_v22, 0.0 }
 0x5b0   :  { %649 = vrot.lane.b32.xlu2 %v635_v23, %s990_s23  ;;  %644 = vrot.lane.b32.xlu0 %v635_v23, %s991_s26  ;;  %637 = vst.msk [vmem:[#allocation4] sm:$0x1] %vm636_vm5, %v635_v23 }
 0x5b1   :  { %639 = vrot.lane.b32.xlu1 %v635_v23, %s992_s9 }
 0x5b8   :  { %664 = vrot.lane.b32.xlu2 %v635_v23, %s993_s10  ;;  %659 = vrot.lane.b32.xlu0 %v635_v23, %s994_s22 }
 0x5b9   :  { %654 = vrot.lane.b32.xlu1 %v635_v23, %s989_s25 }
 0x60a   :  { %v650_v26 = vpop.permute.xlu2 %649 }
 0x612   :  { %v665_v30 = vpop.permute.xlu2 %664 }
 0x61a   :  { %v695_v44 = vpop.f32.mrf.mxu0 }
 0x61b   :  { %v698_v24 = vmax.f32 %v695_v44, 0.0 }
 0x61d   :  { %701 = vrot.lane.b32.xlu2 %v698_v24, %s992_s9  ;;  %709 = vrot.lane.b32.xlu0 %v698_v24, %s990_s23  ;;  %699 = vst.msk [vmem:[#allocation4 + $0x1] sm:$0x1] %vm636_vm5, %v698_v24 }
 0x61e   :  { %705 = vrot.lane.b32.xlu1 %v698_v24, %s991_s26 }
 0x622   :  { %v645_v25 = vpop.permute.xlu0 %644 }
 0x623   :  { %v640_v27 = vpop.permute.xlu1 %639 }
 0x624   :  { %643 = vst.msk [vmem:[#allocation4 - $0x1] sm:$0x2] %vm642_vm6, %v640_v27 }
 0x625   :  { %648 = vst.msk [vmem:[#allocation4 - $0x2] sm:$0x4] %vm647_vm7, %v645_v25  ;;  %713 = vrot.lane.b32.xlu2 %v698_v24, %s989_s25  ;;  %721 = vrot.lane.b32.xlu0 %v698_v24, %s993_s10 }
 0x626   :  { %717 = vrot.lane.b32.xlu1 %v698_v24, %s994_s22  ;;  %653 = vst.msk [vmem:[#allocation4 - $0x3] sm:$0x8] %vm652_vm8, %v650_v26 }
 0x62a   :  { %v660_v28 = vpop.permute.xlu0 %659 }
 0x62b   :  { %v655_v29 = vpop.permute.xlu1 %654 }
 0x62c   :  { %658 = vst.msk [vmem:[#allocation4 - $0x4] sm:$0x10] %vm657_vm9, %v655_v29 }
 0x62d   :  { %663 = vst.msk [vmem:[#allocation4 - $0x5] sm:$0x20] %vm662_vm10, %v660_v28  ;;  %725 = vrot.lane.b32.xlu2 %v698_v24, %s995_s2 }
 0x62e   :  { %669 = vrot.lane.b32.xlu1 %v635_v23, %s995_s2  ;;  %668 = vst.msk [vmem:[#allocation4 - $0x6] sm:$0x40] %vm667_vm11, %v665_v30 }
 0x677   :  { %v702_v39 = vpop.permute.xlu2 %701 }
 0x678   :  { %704 = vst.msk [vmem:[#allocation4] sm:$0x2] %vm642_vm6, %v702_v39 }
 0x67f   :  { %v714_v52 = vpop.permute.xlu2 %713 }
 0x687   :  { %v726_v56 = vpop.permute.xlu2 %725 }
 0x68f   :  { %v710_v51 = vpop.permute.xlu0 %709 }
 0x690   :  { %v706_v53 = vpop.permute.xlu1 %705 }
 0x691   :  { %708 = vst.msk [vmem:[#allocation4 - $0x1] sm:$0x4] %vm647_vm7, %v706_v53 }
 0x692   :  { %712 = vst.msk [vmem:[#allocation4 - $0x2] sm:$0x8] %vm652_vm8, %v710_v51 }
 0x693   :  { %716 = vst.msk [vmem:[#allocation4 - $0x3] sm:$0x10] %vm657_vm9, %v714_v52 }
 0x697   :  { %v722_v54 = vpop.permute.xlu0 %721 }
 0x698   :  { %v718_v55 = vpop.permute.xlu1 %717 }
 0x699   :  { %720 = vst.msk [vmem:[#allocation4 - $0x4] sm:$0x20] %vm662_vm10, %v718_v55 }
 0x69a   :  { %724 = vst.msk [vmem:[#allocation4 - $0x5] sm:$0x40] %vm667_vm11, %v722_v54 }
 0x69b   :  { %728 = vst.msk [vmem:[#allocation4 - $0x6] sm:$0x80] %vm672_vm12, %v726_v56 }
 0x6a0   :  { %v670_v57 = vpop.permute.xlu1 %669 }
 0x6a1   :  { %673 = vst.msk [vmem:[#allocation4 - $0x7] sm:$0x80] %vm672_vm12, %v670_v57 }
 0x6a8   :  { %v729_v58 = vld [vmem:[#allocation4] sm:$0x3] }
 0x6a9   :  { %766 = vmatmul.f32.vlgmr.msra.gmra.mxu1 %v729_v58 }
 0x726   :  { %v767_v63 = vpop.f32.mrf.mxu1 }
 0x727   :  { %v768_v0 = vadd.f32 %v915_v62, %v767_v63 }
 0x729   :  { %v770_v1 = vmax.f32 %v768_v0, 0.0 }
 0x72b   :  { %882 = vmatmul.msk.f32.vlgmr.msra.gmra.mxu2 %vm779_vm13, %v770_v1 }
 0x7ae   :  { %v800_v4 = vpop.f32.mrf.mxu2 }
 0x7af   :  { %v801_v5 = vadd.f32 %v916_v3, %v800_v4 }
 0x7b1   :  { %v803_v6 = vmax.f32 %v801_v5, 0.0 }
 0x7b3   :  { %883 = vmatmul.msk.f32.vlgmr.msrb.gmra.mxu3 %vm810_vm14, %v803_v6 }
 0x836   :  { %v831_v8 = vpop.f32.mrf.mxu3 }
 0x837   :  { %v832_v9 = vadd.f32 %v917_v7, %v831_v8 }
 0x839   :  { %v836_v10 = vmul.f32 1.442695, %v832_v9  ;;  %835 = vst.msk [vmem:[#allocation5] sm:$0x3] %vm834_vm15, %v832_v9 }
 0x83a   :  { %853 = dma.vmem_to_hbm [thread:$0]  %s849_s21, 32, %s851_s15, [#allocation6]  }
 0x83b   :  { %918 = vpow2.f32 %v836_v10 }
 0x841   :  { %v919_v11 = vpop.eup %918 }
 0x842   :  { %839 = vrot.lane.b32.xlu0 %v919_v11, %s984_s28 }
 0x8b4   :  { %v840_v12 = vpop.permute.xlu0 %839 }
 0x8b5   :  { %842 = vst.msk [vmem:[#allocation7] sm:$0x3] %vm834_vm15, %v840_v12 }
 0x8b6   :  { %864 = dma.vmem_to_hbm [thread:$0]  %s860_s16, 32, %s862_s20, [#allocation8]  }
 0x8b7   :  { %968 = dma.done.wait [#allocation6], 32  }
 0x8b8   :  { %969 = vsyncadd [#allocation6], 4294967264 }
 0x8b9   :  { %970 = dma.done.wait [#allocation8], 32  }
 0x8ba   :  { %971 = vsyncadd [#allocation8], 4294967264 }
 0x8bb   :  { %873 = vsyncpa [#allocation6], 1 }
 0x8bc   :  { %874 = vsyncpa [#allocation8], 1 }

</bundles_post_ra>
